<compile_context>
chip_gen: v5e
topology: v5e:2x2
jax: 0.10.0
libtpu: 0.0.40
codegen_flags: <defaults>
</compile_context>

<pallas_src>
import functools

import numpy as np

import jax
import jax.numpy as jnp
from jax.experimental import pallas as pl
from jax.experimental.pallas import tpu as pltpu


def _round_up(x, m):
    return (x + m - 1) // m * m


def _att_layer_kernel(x_ref, wp_bd_ref, bp_ref, wv_bd_ref, ones_bd_ref, aexp_ref,
                      out_ref, alpha_ref, *, S, D):
    # x_ref       : (TB, S*D)   TB batch rows, (patch, feature) flattened lane-dense
    # wp_bd_ref   : (S*D, S*D)  block-diagonal Wp^T (S copies of the DxD block)  -- resident
    # bp_ref      : (1, S*D)    bias tiled S times                               -- resident
    # wv_bd_ref   : (S*D, S*S)  block-diagonal Wv^T                              -- resident
    # ones_bd_ref : (S*S, S*S)  block-diagonal ones (softmax group sums)         -- resident
    # aexp_ref    : (S, S*S, S*D) 0/1 expanders: aexp[k] maps alpha -> (TB,S*D)
    #               with lane q*D+d = alpha[b, q*S + k]                          -- resident
    # out_ref     : (TB, S*D)
    # alpha_ref   : (TB, S*S)   float32
    x = x_ref[...]
    xf = x.astype(jnp.float32)

    # Lane-dense P / tanh: one (TB, S*D) x (S*D, S*D) matmul, bias add, tanh (EUP).
    p = jnp.dot(xf, wp_bd_ref[...], preferred_element_type=jnp.float32) + bp_ref[...]
    feature = jnp.tanh(p)                                                 # (TB, S*D)

    # Attention logits, already in the (TB, S*S) lane layout.
    logits = jnp.dot(feature, wv_bd_ref[...],
                     preferred_element_type=jnp.float32)                  # (TB, S*S)

    # Softmax over each group of S lanes.  Subtracting the per-row max over all
    # S*S lanes is a constant shift inside every group -> exact softmax, and
    # keeps padded (zero) batch rows finite.
    m = jnp.max(logits, axis=-1, keepdims=True)
    e = jnp.exp(logits - m)
    denom = jnp.dot(e, ones_bd_ref[...],
                    preferred_element_type=jnp.float32)                   # per-element group sums
    alpha = e * pl.reciprocal(denom, approx=False)                        # (TB, S*S)
    alpha_ref[...] = alpha.astype(alpha_ref.dtype)                        # single full-width store

    # Attention mix, accumulated lane-dense:
    #   out[b, q*D + d] = sum_k alpha[b, q*S + k] * x[b, k*D + d]
    acc = jnp.zeros(out_ref.shape, jnp.float32)
    for k in range(S):
        a_k = jnp.dot(alpha, aexp_ref[k],
                      preferred_element_type=jnp.float32)                 # (TB, S*D) lane-expanded alpha
        x_k = xf[:, k * D:(k + 1) * D]                                    # (TB, D)
        x_k_tiled = jnp.concatenate([x_k] * S, axis=1)                    # (TB, S*D) lane tile
        acc = acc + a_k * x_k_tiled                                       # full-width VPU FMA
    out_ref[...] = acc.astype(out_ref.dtype)                              # single full-width store


def att_layer(att_input, wp, bp, wv, *, block_batch=None):
    """att_input: (B, S, D); wp: (D, D) PyTorch (out, in) layout; bp: (D,); wv: (S, D)."""
    B, S, D = att_input.shape
    n_att = wv.shape[0]
    if S != n_att:
        raise ValueError(
            f"Att_Layer requires seq == {n_att} (V_linear outputs) so that "
            f"matmul(alpha, att_input) is well formed; got seq={S}."
        )
    if wp.shape != (D, D) or bp.shape != (D,) or wv.shape != (n_att, D):
        raise ValueError("Weight shapes inconsistent with att_input feature dim.")

    # Block size: aim for ~8 grid steps (>= 4 per v7x TensorCore) with blocks in
    # the 256-1024 row range; never exceed the (8-padded) batch.
    if block_batch is None:
        tb = _round_up(-(-B // 8), 8)        # ~B/8 rows per step
        tb = max(256, min(1024, tb))         # keep each block a few hundred KiB
        tb = min(tb, _round_up(B, 8))
    else:
        tb = max(8, _round_up(block_batch, 8))
    B_pad = _round_up(B, tb)

    # Lane-dense, free reshape: (B, S, D) -> (B, S*D).
    x2 = att_input.reshape(B, S * D)
    if B_pad != B:
        x2 = jnp.pad(x2, ((0, B_pad - B), (0, 0)))

    # Precomputed resident weights (block-diagonal so the kernel stays lane-dense).
    f32 = jnp.float32
    eye = jnp.eye(S, dtype=f32)
    wp_bd = jnp.kron(eye, wp.T.astype(f32))            # (S*D, S*D)
    wv_bd = jnp.kron(eye, wv.T.astype(f32))            # (S*D, S*S)
    bp_t = jnp.tile(bp.astype(f32).reshape(1, D), (1, S))          # (1, S*D)
    ones_bd = jnp.kron(eye, jnp.ones((S, S), f32))     # (S*S, S*S)

    aexp_np = np.zeros((S, S * S, S * D), np.float32)  # alpha lane-expanders
    for k in range(S):
        for q in range(S):
            aexp_np[k, q * S + k, q * D:(q + 1) * D] = 1.0
    aexp = jnp.asarray(aexp_np)

    grid = (B_pad // tb,)
    kernel = functools.partial(_att_layer_kernel, S=S, D=D)

    itemsize = 4
    flops = B_pad * (2 * S * D * S * D          # block-diag P matmul
                     + 2 * S * D * S * S        # block-diag logits matmul
                     + 2 * S * S * S * S        # denom matmul
                     + S * 2 * S * S * S * D    # alpha expand matmuls
                     + 2 * S * S * D)           # mix FMAs
    bytes_accessed = (2 * B_pad * S * D + B_pad * S * S) * itemsize \
        + (S * D * S * D + S * D + S * D * S * S + S * S * S * S + S * S * S * S * D) * itemsize
    cost = pl.CostEstimate(
        flops=int(flops),
        transcendentals=int(B_pad * S * (D + S)),
        bytes_accessed=int(bytes_accessed),
    )

    out2, alpha2 = pl.pallas_call(
        kernel,
        out_shape=(
            jax.ShapeDtypeStruct((B_pad, S * D), att_input.dtype),
            jax.ShapeDtypeStruct((B_pad, S * S), jnp.float32),
        ),
        grid_spec=pltpu.PrefetchScalarGridSpec(
            num_scalar_prefetch=0,
            grid=grid,
            in_specs=[
                pl.BlockSpec((tb, S * D), lambda b: (b, 0)),        # att_input block
                pl.BlockSpec((S * D, S * D), lambda b: (0, 0)),     # block-diag Wp^T (resident)
                pl.BlockSpec((1, S * D), lambda b: (0, 0)),         # tiled bias       (resident)
                pl.BlockSpec((S * D, S * S), lambda b: (0, 0)),     # block-diag Wv^T  (resident)
                pl.BlockSpec((S * S, S * S), lambda b: (0, 0)),     # block-diag ones  (resident)
                pl.BlockSpec((S, S * S, S * D), lambda b: (0, 0, 0)),  # alpha expanders (resident)
            ],
            out_specs=[
                pl.BlockSpec((tb, S * D), lambda b: (b, 0)),        # out   (lane-dense)
                pl.BlockSpec((tb, S * S), lambda b: (b, 0)),        # alpha (lane-dense)
            ],
        ),
        compiler_params=pltpu.CompilerParams(
            dimension_semantics=("parallel",),
        ),
        cost_estimate=cost,
    )(x2, wp_bd, bp_t, wv_bd, ones_bd, aexp)

    out = out2[:B].reshape(B, S, D)
    alpha = alpha2[:B].reshape(B, S, n_att)
    return out, alpha


def att_layer_ref(att_input, wp, bp, wv):
    p = jnp.einsum("bsd,od->bso", att_input, wp) + bp
    feature = jnp.tanh(p)
    logits = jnp.einsum("bso,vo->bsv", feature, wv)
    alpha = jax.nn.softmax(logits, axis=2)
    out = jnp.einsum("bsk,bkd->bsd", alpha, att_input)
    return out, alpha


if __name__ == "__main__":
    key = jax.random.PRNGKey(0)
    # S=5 is fixed by V_linear's 5 outputs; the module requires in_dim == out_dim.
    B, S, D = 64, 5, 32
    k1, k2, k3, k4 = jax.random.split(key, 4)

    att_input = jax.random.normal(k1, (B, S, D), dtype=jnp.float32)
    wp = jax.random.normal(k2, (D, D), dtype=jnp.float32) * 0.1   # P_linear: Linear(D, D)
    bp = jax.random.normal(k3, (D,), dtype=jnp.float32) * 0.1
    wv = jax.random.normal(k4, (S, D), dtype=jnp.float32) * 0.1   # V_linear: Linear(D, 5, bias=False)

    out, alpha = jax.jit(att_layer)(att_input, wp, bp, wv)
    out = jax.block_until_ready(out)
    alpha = jax.block_until_ready(alpha)

    out_ref, alpha_ref = att_layer_ref(att_input, wp, bp, wv)
    assert jnp.allclose(out, out_ref, atol=2e-5, rtol=2e-5), \
        float(jnp.max(jnp.abs(out - out_ref)))
    assert jnp.allclose(alpha, alpha_ref, atol=2e-5, rtol=2e-5), \
        float(jnp.max(jnp.abs(alpha - alpha_ref)))

    print("KERNEL_OK")
</pallas_src>

<mosaic_0001>
module attributes {stable_mosaic.version = 11 : i64} {
  func.func @_att_layer_kernel(%arg0: i32, %arg1: memref<64x160xf32, #tpu.memory_space<vmem>>, %arg2: memref<160x160xf32, #tpu.memory_space<vmem>>, %arg3: memref<1x160xf32, #tpu.memory_space<vmem>>, %arg4: memref<160x25xf32, #tpu.memory_space<vmem>>, %arg5: memref<25x25xf32, #tpu.memory_space<vmem>>, %arg6: memref<5x25x160xf32, #tpu.memory_space<vmem>>, %arg7: memref<64x160xf32, #tpu.memory_space<vmem>>, %arg8: memref<64x25xf32, #tpu.memory_space<vmem>>) attributes {dimension_semantics = [#tpu.dimension_semantics<parallel>], iteration_bounds = array<i64: 1>, scalar_prefetch = 0 : i64, scratch_operands = 0 : i64, tpu.core_type = #tpu.core_type<tc>, window_params = [{transform_indices = @transform_0, window_bounds = array<i64: 64, 160>}, {pipeline_mode = #tpu.pipeline_mode<synchronous>, transform_indices = @transform_1, window_bounds = array<i64: 160, 160>}, {pipeline_mode = #tpu.pipeline_mode<synchronous>, transform_indices = @transform_2, window_bounds = array<i64: 1, 160>}, {pipeline_mode = #tpu.pipeline_mode<synchronous>, transform_indices = @transform_3, window_bounds = array<i64: 160, 25>}, {pipeline_mode = #tpu.pipeline_mode<synchronous>, transform_indices = @transform_4, window_bounds = array<i64: 25, 25>}, {pipeline_mode = #tpu.pipeline_mode<synchronous>, transform_indices = @transform_5, window_bounds = array<i64: 5, 25, 160>}, {transform_indices = @transform_6, window_bounds = array<i64: 64, 160>}, {transform_indices = @transform_7, window_bounds = array<i64: 64, 25>}]} {
    %c0 = arith.constant 0 : index
    %c0_0 = arith.constant 0 : index
    %0 = vector.load %arg1[%c0, %c0_0] : memref<64x160xf32, #tpu.memory_space<vmem>>, vector<64x160xf32>
    %c0_1 = arith.constant 0 : index
    %c0_2 = arith.constant 0 : index
    %1 = vector.load %arg2[%c0_1, %c0_2] : memref<160x160xf32, #tpu.memory_space<vmem>>, vector<160x160xf32>
    %cst = arith.constant dense<0.000000e+00> : vector<64x160xf32>
    %2 = tpu.matmul %0, %1, %cst {dimension_numbers = #tpu.dot_dimension_numbers<[1], [0], [0], [1], [0, 0, 1, 1], [], []>} : vector<64x160xf32>, vector<160x160xf32>, vector<64x160xf32> -> vector<64x160xf32>
    %c0_3 = arith.constant 0 : index
    %c0_4 = arith.constant 0 : index
    %3 = vector.load %arg3[%c0_3, %c0_4] : memref<1x160xf32, #tpu.memory_space<vmem>>, vector<1x160xf32>
    %4 = vector.broadcast %3 : vector<1x160xf32> to vector<64x160xf32>
    %5 = arith.addf %2, %4 : vector<64x160xf32>
    %6 = math.tanh %5 : vector<64x160xf32>
    %c0_5 = arith.constant 0 : index
    %c0_6 = arith.constant 0 : index
    %7 = vector.load %arg4[%c0_5, %c0_6] : memref<160x25xf32, #tpu.memory_space<vmem>>, vector<160x25xf32>
    %cst_7 = arith.constant dense<0.000000e+00> : vector<64x25xf32>
    %8 = tpu.matmul %6, %7, %cst_7 {dimension_numbers = #tpu.dot_dimension_numbers<[1], [0], [0], [1], [0, 0, 1, 1], [], []>} : vector<64x160xf32>, vector<160x25xf32>, vector<64x25xf32> -> vector<64x25xf32>
    %cst_8 = arith.constant dense<0xFF800000> : vector<64xf32>
    %9 = vector.multi_reduction <maximumf>, %8, %cst_8 [1] : vector<64x25xf32> to vector<64xf32>
    %10 = vector.shape_cast %9 : vector<64xf32> to vector<64x1xf32>
    %11 = vector.broadcast %10 : vector<64x1xf32> to vector<64x25xf32>
    %12 = arith.subf %8, %11 : vector<64x25xf32>
    %13 = math.exp %12 : vector<64x25xf32>
    %c0_9 = arith.constant 0 : index
    %c0_10 = arith.constant 0 : index
    %14 = vector.load %arg5[%c0_9, %c0_10] : memref<25x25xf32, #tpu.memory_space<vmem>>, vector<25x25xf32>
    %cst_11 = arith.constant dense<0.000000e+00> : vector<64x25xf32>
    %15 = tpu.matmul %13, %14, %cst_11 {dimension_numbers = #tpu.dot_dimension_numbers<[1], [0], [0], [1], [0, 0, 1, 1], [], []>} : vector<64x25xf32>, vector<25x25xf32>, vector<64x25xf32> -> vector<64x25xf32>
    %16 = tpu.reciprocal %15 : vector<64x25xf32> -> vector<64x25xf32>
    %17 = arith.mulf %13, %16 : vector<64x25xf32>
    %c0_12 = arith.constant 0 : index
    %c0_13 = arith.constant 0 : index
    %18 = vector.load %arg8[%c0_12, %c0_13] : memref<64x25xf32, #tpu.memory_space<vmem>>, vector<64x25xf32>
    tpu.vector_store %arg8[%c0_12, %c0_13], %17 {strides = array<i32>} : memref<64x25xf32, #tpu.memory_space<vmem>>, vector<64x25xf32>,
    %cst_14 = arith.constant 0.000000e+00 : f32
    %19 = vector.broadcast %cst_14 : f32 to vector<64x160xf32>
    %c0_15 = arith.constant 0 : index
    %c0_16 = arith.constant 0 : index
    %c0_17 = arith.constant 0 : index
    %20 = vector.load %arg6[%c0_15, %c0_16, %c0_17] : memref<5x25x160xf32, #tpu.memory_space<vmem>>, vector<1x25x160xf32>
    %21 = vector.shape_cast %20 : vector<1x25x160xf32> to vector<25x160xf32>
    %cst_18 = arith.constant dense<0.000000e+00> : vector<64x160xf32>
    %22 = tpu.matmul %17, %21, %cst_18 {dimension_numbers = #tpu.dot_dimension_numbers<[1], [0], [0], [1], [0, 0, 1, 1], [], []>} : vector<64x25xf32>, vector<25x160xf32>, vector<64x160xf32> -> vector<64x160xf32>
    %23 = vector.extract_strided_slice %0 {offsets = [0, 0], sizes = [64, 32], strides = [1, 1]} : vector<64x160xf32> to vector<64x32xf32>
    %24 = tpu.concatenate %23, %23, %23, %23, %23 in 1 : vector<64x32xf32>, vector<64x32xf32>, vector<64x32xf32>, vector<64x32xf32>, vector<64x32xf32> -> vector<64x160xf32>
    %25 = arith.mulf %22, %24 : vector<64x160xf32>
    %26 = arith.addf %19, %25 : vector<64x160xf32>
    %c1 = arith.constant 1 : index
    %c0_19 = arith.constant 0 : index
    %c0_20 = arith.constant 0 : index
    %27 = vector.load %arg6[%c1, %c0_19, %c0_20] : memref<5x25x160xf32, #tpu.memory_space<vmem>>, vector<1x25x160xf32>
    %28 = vector.shape_cast %27 : vector<1x25x160xf32> to vector<25x160xf32>
    %cst_21 = arith.constant dense<0.000000e+00> : vector<64x160xf32>
    %29 = tpu.matmul %17, %28, %cst_21 {dimension_numbers = #tpu.dot_dimension_numbers<[1], [0], [0], [1], [0, 0, 1, 1], [], []>} : vector<64x25xf32>, vector<25x160xf32>, vector<64x160xf32> -> vector<64x160xf32>
    %30 = vector.extract_strided_slice %0 {offsets = [0, 32], sizes = [64, 32], strides = [1, 1]} : vector<64x160xf32> to vector<64x32xf32>
    %31 = tpu.concatenate %30, %30, %30, %30, %30 in 1 : vector<64x32xf32>, vector<64x32xf32>, vector<64x32xf32>, vector<64x32xf32>, vector<64x32xf32> -> vector<64x160xf32>
    %32 = arith.mulf %29, %31 : vector<64x160xf32>
    %33 = arith.addf %26, %32 : vector<64x160xf32>
    %c2 = arith.constant 2 : index
    %c0_22 = arith.constant 0 : index
    %c0_23 = arith.constant 0 : index
    %34 = vector.load %arg6[%c2, %c0_22, %c0_23] : memref<5x25x160xf32, #tpu.memory_space<vmem>>, vector<1x25x160xf32>
    %35 = vector.shape_cast %34 : vector<1x25x160xf32> to vector<25x160xf32>
    %cst_24 = arith.constant dense<0.000000e+00> : vector<64x160xf32>
    %36 = tpu.matmul %17, %35, %cst_24 {dimension_numbers = #tpu.dot_dimension_numbers<[1], [0], [0], [1], [0, 0, 1, 1], [], []>} : vector<64x25xf32>, vector<25x160xf32>, vector<64x160xf32> -> vector<64x160xf32>
    %37 = vector.extract_strided_slice %0 {offsets = [0, 64], sizes = [64, 32], strides = [1, 1]} : vector<64x160xf32> to vector<64x32xf32>
    %38 = tpu.concatenate %37, %37, %37, %37, %37 in 1 : vector<64x32xf32>, vector<64x32xf32>, vector<64x32xf32>, vector<64x32xf32>, vector<64x32xf32> -> vector<64x160xf32>
    %39 = arith.mulf %36, %38 : vector<64x160xf32>
    %40 = arith.addf %33, %39 : vector<64x160xf32>
    %c3 = arith.constant 3 : index
    %c0_25 = arith.constant 0 : index
    %c0_26 = arith.constant 0 : index
    %41 = vector.load %arg6[%c3, %c0_25, %c0_26] : memref<5x25x160xf32, #tpu.memory_space<vmem>>, vector<1x25x160xf32>
    %42 = vector.shape_cast %41 : vector<1x25x160xf32> to vector<25x160xf32>
    %cst_27 = arith.constant dense<0.000000e+00> : vector<64x160xf32>
    %43 = tpu.matmul %17, %42, %cst_27 {dimension_numbers = #tpu.dot_dimension_numbers<[1], [0], [0], [1], [0, 0, 1, 1], [], []>} : vector<64x25xf32>, vector<25x160xf32>, vector<64x160xf32> -> vector<64x160xf32>
    %44 = vector.extract_strided_slice %0 {offsets = [0, 96], sizes = [64, 32], strides = [1, 1]} : vector<64x160xf32> to vector<64x32xf32>
    %45 = tpu.concatenate %44, %44, %44, %44, %44 in 1 : vector<64x32xf32>, vector<64x32xf32>, vector<64x32xf32>, vector<64x32xf32>, vector<64x32xf32> -> vector<64x160xf32>
    %46 = arith.mulf %43, %45 : vector<64x160xf32>
    %47 = arith.addf %40, %46 : vector<64x160xf32>
    %c4 = arith.constant 4 : index
    %c0_28 = arith.constant 0 : index
    %c0_29 = arith.constant 0 : index
    %48 = vector.load %arg6[%c4, %c0_28, %c0_29] : memref<5x25x160xf32, #tpu.memory_space<vmem>>, vector<1x25x160xf32>
    %49 = vector.shape_cast %48 : vector<1x25x160xf32> to vector<25x160xf32>
    %cst_30 = arith.constant dense<0.000000e+00> : vector<64x160xf32>
    %50 = tpu.matmul %17, %49, %cst_30 {dimension_numbers = #tpu.dot_dimension_numbers<[1], [0], [0], [1], [0, 0, 1, 1], [], []>} : vector<64x25xf32>, vector<25x160xf32>, vector<64x160xf32> -> vector<64x160xf32>
    %51 = vector.extract_strided_slice %0 {offsets = [0, 128], sizes = [64, 32], strides = [1, 1]} : vector<64x160xf32> to vector<64x32xf32>
    %52 = tpu.concatenate %51, %51, %51, %51, %51 in 1 : vector<64x32xf32>, vector<64x32xf32>, vector<64x32xf32>, vector<64x32xf32>, vector<64x32xf32> -> vector<64x160xf32>
    %53 = arith.mulf %50, %52 : vector<64x160xf32>
    %54 = arith.addf %47, %53 : vector<64x160xf32>
    %c0_31 = arith.constant 0 : index
    %c0_32 = arith.constant 0 : index
    %55 = vector.load %arg7[%c0_31, %c0_32] : memref<64x160xf32, #tpu.memory_space<vmem>>, vector<64x160xf32>
    tpu.vector_store %arg7[%c0_31, %c0_32], %54 {strides = array<i32>} : memref<64x160xf32, #tpu.memory_space<vmem>>, vector<64x160xf32>,
    return
  }
  func.func @transform_0(%arg0: i32) -> (i32, i32) {
    %c0_i32 = arith.constant 0 : i32
    %c0_i32_0 = arith.constant 0 : i32
    return %arg0, %c0_i32 : i32, i32
  }
  func.func @transform_1(%arg0: i32) -> (i32, i32) {
    %c0_i32 = arith.constant 0 : i32
    %c0_i32_0 = arith.constant 0 : i32
    %c0_i32_1 = arith.constant 0 : i32
    return %c0_i32, %c0_i32_0 : i32, i32
  }
  func.func @transform_2(%arg0: i32) -> (i32, i32) {
    %c0_i32 = arith.constant 0 : i32
    %c0_i32_0 = arith.constant 0 : i32
    %c0_i32_1 = arith.constant 0 : i32
    return %c0_i32, %c0_i32_0 : i32, i32
  }
  func.func @transform_3(%arg0: i32) -> (i32, i32) {
    %c0_i32 = arith.constant 0 : i32
    %c0_i32_0 = arith.constant 0 : i32
    %c0_i32_1 = arith.constant 0 : i32
    return %c0_i32, %c0_i32_0 : i32, i32
  }
  func.func @transform_4(%arg0: i32) -> (i32, i32) {
    %c0_i32 = arith.constant 0 : i32
    %c0_i32_0 = arith.constant 0 : i32
    %c0_i32_1 = arith.constant 0 : i32
    return %c0_i32, %c0_i32_0 : i32, i32
  }
  func.func @transform_5(%arg0: i32) -> (i32, i32, i32) {
    %c0_i32 = arith.constant 0 : i32
    %c0_i32_0 = arith.constant 0 : i32
    %c0_i32_1 = arith.constant 0 : i32
    %c0_i32_2 = arith.constant 0 : i32
    return %c0_i32, %c0_i32_0, %c0_i32_1 : i32, i32, i32
  }
  func.func @transform_6(%arg0: i32) -> (i32, i32) {
    %c0_i32 = arith.constant 0 : i32
    %c0_i32_0 = arith.constant 0 : i32
    return %arg0, %c0_i32 : i32, i32
  }
  func.func @transform_7(%arg0: i32) -> (i32, i32) {
    %c0_i32 = arith.constant 0 : i32
    %c0_i32_0 = arith.constant 0 : i32
    return %arg0, %c0_i32 : i32, i32
  }
}

</mosaic_0001>

<bundles_post_ra>
// kernel: att_layer.1
= control target key start
LH: loop header
LB: loop body
LE: loop exit
PB: predicated region body
PF: predicated region fallthrough
CT: control target
= control target key end

     0   :  { %vm87_vm0 = vcmask 261120   ;;  %vm418_vm1 = vcmask 203776   ;;  %vm495_vm2 = vcmask 1040384   ;;  %s1877_s20 = smov 64   ;;  %s1878_s9 = smov 96   ;;  %s3416_s1 = inlined_call_operand.vmem [shape: f32[160,160], index: 1, kind: input, shape index: {}]   ;;  %s3417_s0 = inlined_call_operand.vmem [shape: f32[64,160], index: 0, kind: input, shape index: {}]   ;;  %s3418_s3 = inlined_call_operand.vmem [shape: f32[160,25], index: 3, kind: input, shape index: {}]   ;;  %s3419_s2 = inlined_call_operand.vmem [shape: f32[1,160], index: 2, kind: input, shape index: {}]   ;;  %s3420_s4 = inlined_call_operand.vmem [shape: f32[25,25], index: 4, kind: input, shape index: {}]   ;;  %s3421_s5 = inlined_call_operand.vmem [shape: f32[5,25,160], index: 5, kind: input, shape index: {}]   ;;  %s3422_s7 = inlined_call_operand.vmem [shape: f32[64,25], index: 7, kind: output, shape index: {1}]   ;;  %s3423_s6 = inlined_call_operand.vmem [shape: f32[64,160], index: 6, kind: output, shape index: {0}]  }
   0x1   :  { %v71_v0 = vld [vmem:[%s3416_s1 + $0xf0] sm:$0xff]  ;;  %v69_v2 = vld [vmem:[%s3416_s1 + $0xe0] sm:$0xff]  ;;  %v72_v6 = vld [vmem:[%s3416_s1 + $0xf8] sm:$0xff] }
   0x2   :  { %v79_v1 = vld [vmem:[%s3416_s1 + $0x130] sm:$0xff]  ;;  %112 = vmatpush.msra.mxu0 %v71_v0  ;;  %v77_v3 = vld [vmem:[%s3416_s1 + $0x120] sm:$0xff]  ;;  %194 = vmatpush.msra.mxu2 %v72_v6  ;;  %v70_v9 = vld [vmem:[%s3416_s1 + $0xe8] sm:$0xff] }
   0x3   :  { %1789 = vmatpush.msra.mxu3 %v79_v1  ;;  %v67_v4 = vld [vmem:[%s3416_s1 + $0xd0] sm:$0xff]  ;;  %165 = vmatpush.msra.mxu1 %v79_v1  ;;  %v65_v7 = vld [vmem:[%s3416_s1 + $0xc0] sm:$0xff]  ;;  %v1952_v10 = vld [vmem:[%s3417_s0 + $0x48] sm:$0xff] }
   0x4   :  { %v75_v5 = vld [vmem:[%s3416_s1 + $0x110] sm:$0xff]  ;;  %113 = vmatpush.msra.mxu0 %v69_v2  ;;  %v73_v8 = vld [vmem:[%s3416_s1 + $0x100] sm:$0xff]  ;;  %v68_v11 = vld [vmem:[%s3416_s1 + $0xd8] sm:$0xff]  ;;  %195 = vmatpush.msra.mxu2 %v70_v9 }
   0x5   :  { %1790 = vmatpush.msra.mxu3 %v77_v3  ;;  %166 = vmatpush.msra.mxu1 %v77_v3  ;;  %v80_v12 = vld [vmem:[%s3416_s1 + $0x138] sm:$0xff]  ;;  %v63_v13 = vld [vmem:[%s3416_s1 + $0xb0] sm:$0xff]  ;;  %v66_v14 = vld [vmem:[%s3416_s1 + $0xc8] sm:$0xff] }
   0x6   :  { %114 = vmatpush.msra.mxu0 %v67_v4  ;;  %v61_v15 = vld [vmem:[%s3416_s1 + $0xa0] sm:$0xff]  ;;  %196 = vmatpush.msra.mxu2 %v68_v11  ;;  %v78_v16 = vld [vmem:[%s3416_s1 + $0x128] sm:$0xff]  ;;  %v64_v17 = vld [vmem:[%s3416_s1 + $0xb8] sm:$0xff] }
   0x7   :  { %1791 = vmatpush.msra.mxu3 %v75_v5  ;;  %167 = vmatpush.msra.mxu1 %v75_v5  ;;  %v59_v18 = vld [vmem:[%s3416_s1 + $0x90] sm:$0xff]  ;;  %v76_v19 = vld [vmem:[%s3416_s1 + $0x118] sm:$0xff]  ;;  %v62_v20 = vld [vmem:[%s3416_s1 + $0xa8] sm:$0xff] }
   0x8   :  { %115 = vmatpush.msra.mxu0 %v65_v7  ;;  %197 = vmatpush.msra.mxu2 %v66_v14  ;;  %v57_v21 = vld [vmem:[%s3416_s1 + $0x80] sm:$0xff]  ;;  %v1992_v22 = vld [vmem:[%s3417_s0 + $0x58] sm:$0xff]  ;;  %v74_v24 = vld [vmem:[%s3416_s1 + $0x108] sm:$0xff] }
   0x9   :  { %1792 = vmatpush.msra.mxu3 %v73_v8  ;;  %168 = vmatpush.msra.mxu1 %v73_v8  ;;  %v60_v23 = vld [vmem:[%s3416_s1 + $0x98] sm:$0xff]  ;;  %v55_v25 = vld [vmem:[%s3416_s1 + $0x70] sm:$0xff]  ;;  %v2006_v26 = vld [vmem:[%s3417_s0 + $0x8] sm:$0xff] }
   0xa   :  { %1638 = vmatmul.msk.f32.vlgmr.msra.gmra.mxu3 %vm87_vm0, %v1952_v10  ;;  %116 = vmatpush.msra.mxu0 %v63_v13  ;;  %v58_v27 = vld [vmem:[%s3416_s1 + $0x88] sm:$0xff]  ;;  %v53_v28 = vld [vmem:[%s3416_s1 + $0x60] sm:$0xff]  ;;  %v56_v29 = vld [vmem:[%s3416_s1 + $0x78] sm:$0xff] }
   0xb   :  { %247 = vmatpush.msrb.mxu3 %v80_v12  ;;  %198 = vmatpush.msra.mxu2 %v64_v17  ;;  %v51_v30 = vld [vmem:[%s3416_s1 + $0x50] sm:$0xff]  ;;  %v54_v31 = vld [vmem:[%s3416_s1 + $0x68] sm:$0xff]  ;;  %v49_v32 = vld [vmem:[%s3416_s1 + $0x40] sm:$0xff] }
   0xc   :  { %117 = vmatpush.msra.mxu0 %v61_v15  ;;  %1634 = vmatmul.msk.f32.vlgmr.msra.gmra.mxu1 %vm87_vm0, %v2006_v26  ;;  %v2033_v33 = vld [vmem:[%s3417_s0 + $0x68] sm:$0xff]  ;;  %v52_v34 = vld [vmem:[%s3416_s1 + $0x58] sm:$0xff]  ;;  %v47_v35 = vld [vmem:[%s3416_s1 + $0x30] sm:$0xff] }
   0xd   :  { %248 = vmatpush.msrb.mxu3 %v78_v16  ;;  %199 = vmatpush.msra.mxu2 %v62_v20  ;;  %v2044_v36 = vld [vmem:[%s3417_s0 + $0x18] sm:$0xff]  ;;  %v50_v37 = vld [vmem:[%s3416_s1 + $0x48] sm:$0xff]  ;;  %v45_v38 = vld [vmem:[%s3416_s1 + $0x20] sm:$0xff] }
   0xe   :  { %118 = vmatpush.msra.mxu0 %v59_v18  ;;  %v48_v39 = vld [vmem:[%s3416_s1 + $0x38] sm:$0xff]  ;;  %v43_v40 = vld [vmem:[%s3416_s1 + $0x10] sm:$0xff]  ;;  %v46_v41 = vld [vmem:[%s3416_s1 + $0x28] sm:$0xff] }
   0xf   :  { %249 = vmatpush.msrb.mxu3 %v76_v19  ;;  %200 = vmatpush.msra.mxu2 %v60_v23  ;;  %v41_v42 = vld [vmem:[%s3416_s1] sm:$0xff]  ;;  %v2076_v44 = vld [vmem:[%s3417_s0 + $0x78] sm:$0xff]  ;;  %v2084_v46 = vld [vmem:[%s3417_s0 + $0x28] sm:$0xff] }
  0x10   :  { %119 = vmatpush.msra.mxu0 %v57_v21  ;;  %v2071_v43 = vld [vmem:[%s3417_s0] sm:$0xff]  ;;  %v44_v45 = vld [vmem:[%s3416_s1 + $0x18] sm:$0xff]  ;;  %v42_v47 = vld [vmem:[%s3416_s1 + $0x8] sm:$0xff] }
  0x11   :  { %250 = vmatpush.msrb.mxu3 %v74_v24  ;;  %201 = vmatpush.msra.mxu2 %v58_v27  ;;  %v2098_v48 = vld [vmem:[%s3417_s0 + $0x10] sm:$0xff]  ;;  %v2103_v49 = vld [vmem:[%s3417_s0 + $0x38] sm:$0xff]  ;;  %v2114_v50 = vld [vmem:[%s3417_s0 + $0x20] sm:$0xff] }
  0x12   :  { %1639 = vmatmul.msk.f32.gmra.mxu3 %vm87_vm0, %v1992_v22  ;;  %120 = vmatpush.msra.mxu0 %v55_v25  ;;  %v2123_v51 = vld [vmem:[%s3417_s0 + $0x30] sm:$0xff]  ;;  %v2132_v52 = vld [vmem:[%s3417_s0 + $0x40] sm:$0xff]  ;;  %v311_v53 = vld [vmem:[%s3418_s3 + $0x98] sm:$0xff] }
  0x13   :  { %202 = vmatpush.msra.mxu2 %v56_v29  ;;  %v310_v54 = vld [vmem:[%s3418_s3 + $0x90] sm:$0xff]  ;;  %v307_v55 = vld [vmem:[%s3418_s3 + $0x78] sm:$0xff]  ;;  %389 = vmatpush.msra.mxu3 %v311_v53  ;;  %v2159_v57 = vld [vmem:[%s3417_s0 + $0x60] sm:$0xff] }
  0x14   :  { %121 = vmatpush.msra.mxu0 %v53_v28  ;;  %1635 = vmatmul.msk.f32.gmra.mxu1 %vm87_vm0, %v2044_v36  ;;  %v2150_v56 = vld [vmem:[%s3417_s0 + $0x50] sm:$0xff]  ;;  %v305_v60 = vld [vmem:[%s3418_s3 + $0x68] sm:$0xff]  ;;  %v304_v61 = vld [vmem:[%s3418_s3 + $0x60] sm:$0xff] }
  0x15   :  { %203 = vmatpush.msra.mxu2 %v54_v31  ;;  %336 = vmatpush.msrb.mxu1 %v307_v55  ;;  %v2168_v58 = vld [vmem:[%s3417_s0 + $0x70] sm:$0xff]  ;;  %v303_v62 = vld [vmem:[%s3418_s3 + $0x58] sm:$0xff]  ;;  %v309_v0 = vld [vmem:[%s3418_s3 + $0x88] sm:$0xff] }
  0x16   :  { %122 = vmatpush.msra.mxu0 %v51_v30  ;;  %390 = vmatpush.msra.mxu3 %v310_v54  ;;  %v306_v59 = vld [vmem:[%s3418_s3 + $0x70] sm:$0xff]  ;;  %v301_v1 = vld [vmem:[%s3418_s3 + $0x48] sm:$0xff]  ;;  %v300_v2 = vld [vmem:[%s3418_s3 + $0x40] sm:$0xff] }
  0x17   :  { %204 = vmatpush.msra.mxu2 %v52_v34  ;;  %337 = vmatpush.msrb.mxu1 %v306_v59  ;;  %v302_v63 = vld [vmem:[%s3418_s3 + $0x50] sm:$0xff]  ;;  %v299_v3 = vld [vmem:[%s3418_s3 + $0x38] sm:$0xff]  ;;  %v297_v5 = vld [vmem:[%s3418_s3 + $0x28] sm:$0xff] }
  0x18   :  { %123 = vmatpush.msra.mxu0 %v49_v32  ;;  %391 = vmatpush.msra.mxu3 %v309_v0  ;;  %v298_v4 = vld [vmem:[%s3418_s3 + $0x30] sm:$0xff]  ;;  %v296_v6 = vld [vmem:[%s3418_s3 + $0x20] sm:$0xff]  ;;  %v295_v7 = vld [vmem:[%s3418_s3 + $0x18] sm:$0xff] }
  0x19   :  { %205 = vmatpush.msra.mxu2 %v50_v37  ;;  %338 = vmatpush.msrb.mxu1 %v305_v60  ;;  %v294_v8 = vld [vmem:[%s3418_s3 + $0x10] sm:$0xff]  ;;  %v293_v9 = vld [vmem:[%s3418_s3 + $0x8] sm:$0xff]  ;;  %v308_v11 = vld [vmem:[%s3418_s3 + $0x80] sm:$0xff] }
  0x1a   :  { %1640 = vmatmul.msk.f32.gmra.mxu3 %vm87_vm0, %v2033_v33  ;;  %124 = vmatpush.msra.mxu0 %v47_v35  ;;  %v292_v12 = vld [vmem:[%s3418_s3] sm:$0xff] }
  0x1b   :  { %206 = vmatpush.msra.mxu2 %v48_v39  ;;  %339 = vmatpush.msrb.mxu1 %v304_v61  ;;  %v81_v15 = vld [vmem:[%s3419_s2] sm:$0x3] }
  0x1c   :  { %125 = vmatpush.msra.mxu0 %v45_v38  ;;  %1636 = vmatmul.msk.f32.gmra.mxu1 %vm87_vm0, %v2084_v46  ;;  %v2232_v17 = vperm.slane %v81_v15, 0  ;;  %v2239_v25 = vperm.slane %v81_v15, 1 }
  0x1d   :  { %207 = vmatpush.msra.mxu2 %v46_v41  ;;  %340 = vmatpush.msrb.mxu1 %v303_v62 }
  0x1e   :  { %126 = vmatpush.msra.mxu0 %v43_v40  ;;  %392 = vmatpush.msra.mxu3 %v308_v11 }
  0x1f   :  { %208 = vmatpush.msra.mxu2 %v44_v45  ;;  %341 = vmatpush.msrb.mxu1 %v302_v63 }
  0x20   :  { %127 = vmatpush.msra.mxu0 %v41_v42 }
  0x21   :  { %128 = vmatmul.f32.vlgmr.msra.gmra.mxu0 %v2071_v43  ;;  %209 = vmatpush.msra.mxu2 %v42_v47 }
  0x22   :  { %1641 = vmatmul.msk.f32.gmra.mxu3 %vm87_vm0, %v2076_v44  ;;  %210 = vmatmul.f32.vlgmr.msra.gmra.mxu2 %v2071_v43 }
  0x23   :  { %342 = vmatpush.msrb.mxu1 %v301_v1 }
  0x24   :  { %1637 = vmatmul.msk.f32.gmra.mxu1 %vm87_vm0, %v2103_v49 }
  0x25   :  { %343 = vmatpush.msrb.mxu1 %v300_v2 }
  0x27   :  { %344 = vmatpush.msrb.mxu1 %v299_v3 }
  0x29   :  { %131 = vmatmul.f32.gmra.mxu0 %v2098_v48  ;;  %345 = vmatpush.msrb.mxu1 %v298_v4 }
  0x2a   :  { %1642 = vmatmul.msk.f32.vlgmr.msrb.gmra.mxu3 %vm87_vm0, %v2006_v26  ;;  %213 = vmatmul.f32.gmra.mxu2 %v2098_v48 }
  0x2b   :  { %346 = vmatpush.msrb.mxu1 %v297_v5 }
  0x2d   :  { %347 = vmatpush.msrb.mxu1 %v296_v6 }
  0x2f   :  { %348 = vmatpush.msrb.mxu1 %v295_v7 }
  0x31   :  { %134 = vmatmul.f32.gmra.mxu0 %v2114_v50  ;;  %349 = vmatpush.msrb.mxu1 %v294_v8 }
  0x32   :  { %1643 = vmatmul.msk.f32.gmra.mxu3 %vm87_vm0, %v2044_v36  ;;  %216 = vmatmul.f32.gmra.mxu2 %v2114_v50 }
  0x33   :  { %350 = vmatpush.msrb.mxu1 %v293_v9 }
  0x35   :  { %351 = vmatpush.msrb.mxu1 %v292_v12 }
  0x39   :  { %137 = vmatmul.f32.gmra.mxu0 %v2123_v51 }
  0x3a   :  { %1644 = vmatmul.msk.f32.gmra.mxu3 %vm87_vm0, %v2084_v46  ;;  %219 = vmatmul.f32.gmra.mxu2 %v2123_v51 }
  0x41   :  { %140 = vmatmul.f32.gmra.mxu0 %v2132_v52 }
  0x42   :  { %1645 = vmatmul.msk.f32.gmra.mxu3 %vm87_vm0, %v2103_v49  ;;  %222 = vmatmul.f32.gmra.mxu2 %v2132_v52 }
  0x49   :  { %143 = vmatmul.f32.gmra.mxu0 %v2150_v56 }
  0x4a   :  { %1646 = vmatmul.msk.f32.gmra.mxu3 %vm87_vm0, %v1952_v10  ;;  %225 = vmatmul.f32.gmra.mxu2 %v2150_v56 }
  0x51   :  { %146 = vmatmul.f32.gmra.mxu0 %v2159_v57 }
  0x52   :  { %1647 = vmatmul.msk.f32.gmra.mxu3 %vm87_vm0, %v1992_v22  ;;  %228 = vmatmul.f32.gmra.mxu2 %v2159_v57 }
  0x59   :  { %149 = vmatmul.f32.gmra.mxu0 %v2168_v58 }
  0x5a   :  { %1648 = vmatmul.msk.f32.gmra.mxu3 %vm87_vm0, %v2033_v33  ;;  %231 = vmatmul.f32.gmra.mxu2 %v2168_v58 }
  0x62   :  { %1649 = vmatmul.msk.f32.gmra.mxu3 %vm87_vm0, %v2076_v44 }
  0x89   :  { %v170_v16 = vpop.f32.mrf.mxu1 }
  0x8d   :  { %v182_v13 = vpop.f32.mrf.mxu3 }
  0x91   :  { %v173_v23 = vpop.f32.mrf.mxu1 }
  0x95   :  { %v2227_v14 = vpop.f32.mrf.mxu3 }
  0x99   :  { %v176_v35 = vpop.f32.mrf.mxu1 }
  0x9d   :  { %v2234_v18 = vpop.f32.mrf.mxu3 }
  0x9e   :  { %v129_v19 = vpop.f32.mrf.mxu0 }
  0x9f   :  { %v130_v20 = vadd.f32 %v129_v19, %v2232_v17 }
  0xa1   :  { %v171_v21 = vadd.f32 %v170_v16, %v130_v20  ;;  %v179_v59 = vpop.f32.mrf.mxu1 }
  0xa3   :  { %1796 = vtanh.f32 %v171_v21 }
  0xa5   :  { %v2237_v24 = vpop.f32.mrf.mxu3  ;;  %v211_v29 = vpop.f32.mrf.mxu2 }
  0xa6   :  { %v132_v27 = vpop.f32.mrf.mxu0  ;;  %v212_v32 = vadd.f32 %v211_v29, %v2239_v25 }
  0xa7   :  { %v133_v28 = vadd.f32 %v132_v27, %v2232_v17 }
  0xa9   :  { %v1797_v30 = vpop.eup %1796  ;;  %v174_v31 = vadd.f32 %v173_v23, %v133_v28 }
  0xaa   :  { %352 = vmatmul.f32.vlgmr.msrb.gmra.mxu1 %v1797_v30 }
  0xab   :  { %1798 = vtanh.f32 %v174_v31 }
  0xad   :  { %v252_v34 = vpop.f32.mrf.mxu3  ;;  %v214_v40 = vpop.f32.mrf.mxu2 }
  0xae   :  { %v253_v37 = vadd.f32 %v252_v34, %v212_v32  ;;  %v135_v38 = vpop.f32.mrf.mxu0  ;;  %v215_v45 = vadd.f32 %v214_v40, %v2239_v25 }
  0xaf   :  { %v136_v39 = vadd.f32 %v135_v38, %v2232_v17 }
  0xb0   :  { %1800 = vtanh.f32 %v253_v37 }
  0xb1   :  { %v1799_v41 = vpop.eup %1798  ;;  %v177_v42 = vadd.f32 %v176_v35, %v136_v39 }
  0xb2   :  { %355 = vmatmul.f32.gmra.mxu1 %v1799_v41 }
  0xb3   :  { %1802 = vtanh.f32 %v177_v42 }
  0xb5   :  { %v255_v47 = vpop.f32.mrf.mxu3  ;;  %v217_v61 = vpop.f32.mrf.mxu2 }
  0xb6   :  { %v1801_v53 = vpop.eup %1800  ;;  %v256_v54 = vadd.f32 %v255_v47, %v215_v45  ;;  %v138_v55 = vpop.f32.mrf.mxu0  ;;  %v218_v0 = vadd.f32 %v217_v61, %v2239_v25 }
  0xb7   :  { %1650 = vmatmul.msk.f32.vlgmr.msra.gmra.mxu3 %vm87_vm0, %v1801_v53  ;;  %v139_v60 = vadd.f32 %v138_v55, %v2232_v17 }
  0xb8   :  { %1804 = vtanh.f32 %v256_v54 }
  0xb9   :  { %v1803_v62 = vpop.eup %1802  ;;  %v180_v63 = vadd.f32 %v179_v59, %v139_v60 }
  0xba   :  { %358 = vmatmul.f32.gmra.mxu1 %v1803_v62 }
  0xbb   :  { %1806 = vtanh.f32 %v180_v63 }
  0xbd   :  { %v258_v1 = vpop.f32.mrf.mxu3  ;;  %v220_v6 = vpop.f32.mrf.mxu2 }
  0xbe   :  { %v1805_v2 = vpop.eup %1804  ;;  %v259_v3 = vadd.f32 %v258_v1, %v218_v0  ;;  %v141_v4 = vpop.f32.mrf.mxu0  ;;  %v221_v9 = vadd.f32 %v220_v6, %v2239_v25 }
  0xbf   :  { %1651 = vmatmul.msk.f32.gmra.mxu3 %vm87_vm0, %v1805_v2  ;;  %v142_v5 = vadd.f32 %v141_v4, %v2232_v17 }
  0xc0   :  { %1808 = vtanh.f32 %v259_v3 }
  0xc1   :  { %v1807_v7 = vpop.eup %1806  ;;  %v183_v8 = vadd.f32 %v182_v13, %v142_v5 }
  0xc2   :  { %361 = vmatmul.f32.gmra.mxu1 %v1807_v7 }
  0xc3   :  { %1810 = vtanh.f32 %v183_v8 }
  0xc5   :  { %v261_v11 = vpop.f32.mrf.mxu3  ;;  %v223_v20 = vpop.f32.mrf.mxu2 }
  0xc6   :  { %v1809_v12 = vpop.eup %1808  ;;  %v262_v15 = vadd.f32 %v261_v11, %v221_v9  ;;  %v144_v16 = vpop.f32.mrf.mxu0  ;;  %v224_v27 = vadd.f32 %v223_v20, %v2239_v25 }
  0xc7   :  { %1652 = vmatmul.msk.f32.gmra.mxu3 %vm87_vm0, %v1809_v12  ;;  %v145_v19 = vadd.f32 %v144_v16, %v2232_v17 }
  0xc8   :  { %1812 = vtanh.f32 %v262_v15 }
  0xc9   :  { %v1811_v21 = vpop.eup %1810  ;;  %v186_v23 = vadd.f32 %v2227_v14, %v145_v19 }
  0xca   :  { %364 = vmatmul.f32.gmra.mxu1 %v1811_v21  ;;  %v470_v21 = vld [vmem:[%s3420_s4 + $0x18] sm:$0x1] }
  0xcb   :  { %1814 = vtanh.f32 %v186_v23  ;;  %v469_v23 = vld [vmem:[%s3420_s4 + $0x10] sm:$0xff]  ;;  %1658 = vmatpush.msk.msrb.mxu0 %vm495_vm2, %v470_v21 }
  0xcd   :  { %v264_v13 = vpop.f32.mrf.mxu3  ;;  %v226_v32 = vpop.f32.mrf.mxu2  ;;  %512 = vmatpush.msrb.mxu0 %v469_v23 }
  0xce   :  { %v1813_v28 = vpop.eup %1812  ;;  %v265_v29 = vadd.f32 %v264_v13, %v224_v27  ;;  %v147_v30 = vpop.f32.mrf.mxu0  ;;  %v227_v37 = vadd.f32 %v226_v32, %v2239_v25  ;;  %v468_v27 = vld [vmem:[%s3420_s4 + $0x8] sm:$0xff] }
  0xcf   :  { %1653 = vmatmul.msk.f32.gmra.mxu3 %vm87_vm0, %v1813_v28  ;;  %v148_v31 = vadd.f32 %v147_v30, %v2232_v17  ;;  %v467_v28 = vld [vmem:[%s3420_s4] sm:$0xff]  ;;  %513 = vmatpush.msrb.mxu0 %v468_v27  ;;  %s1876_s4 = smov 32  }
  0xd0   :  { %1816 = vtanh.f32 %v265_v29 }
  0xd1   :  { %v1815_v34 = vpop.eup %1814  ;;  %v189_v35 = vadd.f32 %v2234_v18, %v148_v31  ;;  %514 = vmatpush.msrb.mxu0 %v467_v28  ;;  %v1685_v28 = vld [vmem:[%s3421_s5 + $0x40] sm:$0xff] }
  0xd2   :  { %367 = vmatmul.f32.gmra.mxu1 %v1815_v34 }
  0xd3   :  { %1818 = vtanh.f32 %v189_v35 }
  0xd5   :  { %v267_v14 = vpop.f32.mrf.mxu3  ;;  %v229_v42 = vpop.f32.mrf.mxu2 }
  0xd6   :  { %v1817_v38 = vpop.eup %1816  ;;  %v268_v39 = vadd.f32 %v267_v14, %v227_v37  ;;  %v150_v40 = vpop.f32.mrf.mxu0  ;;  %v230_v53 = vadd.f32 %v229_v42, %v2239_v25 }
  0xd7   :  { %1654 = vmatmul.msk.f32.gmra.mxu3 %vm87_vm0, %v1817_v38  ;;  %v151_v41 = vadd.f32 %v150_v40, %v2232_v17 }
  0xd8   :  { %1820 = vtanh.f32 %v268_v39 }
  0xd9   :  { %v1819_v45 = vpop.eup %1818  ;;  %v192_v47 = vadd.f32 %v2237_v24, %v151_v41 }
  0xda   :  { %370 = vmatmul.f32.gmra.mxu1 %v1819_v45 }
  0xdb   :  { %1822 = vtanh.f32 %v192_v47 }
  0xdd   :  { %v270_v18 = vpop.f32.mrf.mxu3  ;;  %v232_v59 = vpop.f32.mrf.mxu2 }
  0xde   :  { %v1821_v54 = vpop.eup %1820  ;;  %v271_v55 = vadd.f32 %v270_v18, %v230_v53  ;;  %v233_v61 = vadd.f32 %v232_v59, %v2239_v25 }
  0xdf   :  { %1655 = vmatmul.msk.f32.gmra.mxu3 %vm87_vm0, %v1821_v54 }
  0xe0   :  { %1824 = vtanh.f32 %v271_v55 }
  0xe1   :  { %v1823_v60 = vpop.eup %1822 }
  0xe2   :  { %373 = vmatmul.f32.gmra.mxu1 %v1823_v60 }
  0xe5   :  { %v273_v17 = vpop.f32.mrf.mxu3 }
  0xe6   :  { %v1825_v62 = vpop.eup %1824  ;;  %v274_v63 = vadd.f32 %v273_v17, %v233_v61 }
  0xe7   :  { %1656 = vmatmul.msk.f32.gmra.mxu3 %vm87_vm0, %v1825_v62 }
  0xe8   :  { %1826 = vtanh.f32 %v274_v63 }
  0xee   :  { %v1827_v24 = vpop.eup %1826 }
  0xef   :  { %1657 = vmatmul.msk.f32.gmra.mxu3 %vm87_vm0, %v1827_v24 }
 0x127   :  { %v353_v0 = vpop.f32.mrf.mxu1 }
 0x12f   :  { %v356_v1 = vpop.f32.mrf.mxu1 }
 0x137   :  { %v359_v5 = vpop.f32.mrf.mxu1 }
 0x13a   :  { %v394_v2 = vpop.f32.mrf.mxu3 }
 0x13b   :  { %v395_v3 = vadd.f32 %v394_v2, %v353_v0 }
 0x13d   :  { %v419_v4 = vsel %vm418_vm1, %v395_v3, -inf }
 0x13e   :  { %420 = vmax.xlane.f32.xlu0 %v419_v4 }
 0x13f   :  { %v362_v8 = vpop.f32.mrf.mxu1 }
 0x142   :  { %v397_v25 = vpop.f32.mrf.mxu3 }
 0x143   :  { %v398_v6 = vadd.f32 %v397_v25, %v356_v1 }
 0x145   :  { %v422_v7 = vsel %vm418_vm1, %v398_v6, -inf }
 0x146   :  { %423 = vmax.xlane.f32.xlu0 %v422_v7  ;;  %v675_v7 = vld [vmem:[%s3421_s5 + $0x38] sm:$0x1] }
 0x147   :  { %v365_v19 = vpop.f32.mrf.mxu1  ;;  %1676 = vmatpush.msk.msra.mxu1 %vm495_vm2, %v675_v7 }
 0x14a   :  { %v400_v9 = vpop.f32.mrf.mxu3 }
 0x14b   :  { %v401_v11 = vadd.f32 %v400_v9, %v359_v5  ;;  %v673_v9 = vld [vmem:[%s3421_s5 + $0x28] sm:$0xff] }
 0x14c   :  { %760 = vmatpush.msra.mxu1 %v673_v9 }
 0x14d   :  { %v425_v12 = vsel %vm418_vm1, %v401_v11, -inf }
 0x14e   :  { %426 = vmax.xlane.f32.xlu1 %v425_v12  ;;  %v671_v12 = vld [vmem:[%s3421_s5 + $0x18] sm:$0xff] }
 0x14f   :  { %v368_v31 = vpop.f32.mrf.mxu1  ;;  %761 = vmatpush.msra.mxu1 %v671_v12 }
 0x152   :  { %v403_v15 = vpop.f32.mrf.mxu3 }
 0x153   :  { %v2270_v16 = vadd.f32 %v403_v15, %v362_v8  ;;  %v672_v8 = vld [vmem:[%s3421_s5 + $0x20] sm:$0xff] }
 0x155   :  { %v428_v20 = vsel %vm418_vm1, %v2270_v16, -inf }
 0x156   :  { %429 = vmax.xlane.f32.xlu1 %v428_v20 }
 0x157   :  { %v371_v37 = vpop.f32.mrf.mxu1 }
 0x15a   :  { %v406_v13 = vpop.f32.mrf.mxu3 }
 0x15b   :  { %v407_v29 = vadd.f32 %v406_v13, %v365_v19 }
 0x15d   :  { %v431_v30 = vsel %vm418_vm1, %v407_v29, -inf }
 0x15e   :  { %432 = vmax.xlane.f32.xlu2 %v431_v30 }
 0x15f   :  { %v374_v40 = vpop.f32.mrf.mxu1 }
 0x162   :  { %v409_v32 = vpop.f32.mrf.mxu3 }
 0x163   :  { %v2288_v34 = vadd.f32 %v409_v32, %v368_v31 }
 0x165   :  { %v434_v35 = vsel %vm418_vm1, %v2288_v34, -inf }
 0x166   :  { %435 = vmax.xlane.f32.xlu2 %v434_v35 }
 0x16a   :  { %v412_v14 = vpop.f32.mrf.mxu3 }
 0x16b   :  { %v2292_v38 = vadd.f32 %v412_v14, %v371_v37 }
 0x16d   :  { %v437_v39 = vsel %vm418_vm1, %v2292_v38, -inf }
 0x16e   :  { %438 = vmax.xlane.f32.xlu0 %v437_v39 }
 0x172   :  { %v415_v41 = vpop.f32.mrf.mxu3 }
 0x173   :  { %v2296_v42 = vadd.f32 %v415_v41, %v374_v40 }
 0x175   :  { %v440_v45 = vsel %vm418_vm1, %v2296_v42, -inf }
 0x176   :  { %441 = vmax.xlane.f32.xlu1 %v440_v45 }
 0x17e   :  { %796 = vrot.lane.b32.xlu2 %v2071_v43, %s1876_s4 }
 0x182   :  { %798 = vrot.lane.b32.xlu0 %v2098_v48, %s1876_s4 }
 0x186   :  { %802 = vrot.lane.b32.xlu2 %v2123_v51, %s1876_s4 }
 0x18a   :  { %804 = vrot.lane.b32.xlu0 %v2132_v52, %s1876_s4 }
 0x18e   :  { %806 = vrot.lane.b32.xlu2 %v2150_v56, %s1876_s4 }
 0x18f   :  { %800 = vrot.lane.b32.xlu1 %v2114_v50, %s1876_s4 }
 0x192   :  { %810 = vrot.lane.b32.xlu0 %v2168_v58, %s1876_s4 }
 0x196   :  { %820 = vrot.lane.b32.xlu2 %v2071_v43, %s1877_s20 }
 0x197   :  { %808 = vrot.lane.b32.xlu1 %v2159_v57, %s1876_s4 }
 0x19a   :  { %824 = vrot.lane.b32.xlu0 %v2114_v50, %s1877_s20 }
 0x19e   :  { %826 = vrot.lane.b32.xlu2 %v2123_v51, %s1877_s20 }
 0x19f   :  { %822 = vrot.lane.b32.xlu1 %v2098_v48, %s1877_s20 }
 0x1a2   :  { %830 = vrot.lane.b32.xlu0 %v2150_v56, %s1877_s20 }
 0x1a6   :  { %832 = vrot.lane.b32.xlu2 %v2159_v57, %s1877_s20 }
 0x1a7   :  { %828 = vrot.lane.b32.xlu1 %v2132_v52, %s1877_s20 }
 0x1aa   :  { %844 = vrot.lane.b32.xlu0 %v2071_v43, %s1878_s9 }
 0x1ae   :  { %846 = vrot.lane.b32.xlu2 %v2098_v48, %s1878_s9 }
 0x1af   :  { %834 = vrot.lane.b32.xlu1 %v2168_v58, %s1877_s20 }
 0x1b1   :  { %v421_v47 = vpop.xlane.xlu0 %420 }
 0x1b2   :  { %v443_v53 = vsub.f32 %v395_v3, %v421_v47  ;;  %850 = vrot.lane.b32.xlu0 %v2123_v51, %s1878_s9 }
 0x1b4   :  { %v451_v18 = vmul.f32 1.442695, %v443_v53 }
 0x1b6   :  { %1828 = vpow2.f32 %v451_v18  ;;  %852 = vrot.lane.b32.xlu2 %v2132_v52, %s1878_s9  ;;  %v1691_v52 = vld [vmem:[%s3421_s5 + $0x70] sm:$0x1] }
 0x1b7   :  { %848 = vrot.lane.b32.xlu1 %v2114_v50, %s1878_s9  ;;  %1693 = vmatpush.msk.msrb.mxu3 %vm495_vm2, %v1691_v52 }
 0x1b9   :  { %v424_v54 = vpop.xlane.xlu0 %423 }
 0x1ba   :  { %v444_v55 = vsub.f32 %v398_v6, %v424_v54  ;;  %v674_v6 = vld [vmem:[%s3421_s5 + $0x30] sm:$0x1]  ;;  %856 = vrot.lane.b32.xlu0 %v2159_v57, %s1878_s9  ;;  %v1688_v57 = vld [vmem:[%s3421_s5 + $0x58] sm:$0xff] }
 0x1bb   :  { %1667 = vmatpush.msk.msrb.mxu2 %vm495_vm2, %v674_v6 }
 0x1bc   :  { %v2316_v59 = vpop.eup %1828  ;;  %v453_v60 = vmul.f32 1.442695, %v444_v55 }
 0x1bd   :  { %1659 = vmatmul.msk.f32.vlgmr.msrb.gmra.mxu0 %vm418_vm1, %v2316_v59  ;;  %719 = vmatpush.msrb.mxu2 %v672_v8 }
 0x1be   :  { %1830 = vpow2.f32 %v453_v60  ;;  %858 = vrot.lane.b32.xlu2 %v2168_v58, %s1878_s9  ;;  %v668_v58 = vld [vmem:[%s3421_s5] sm:$0xff] }
 0x1bf   :  { %854 = vrot.lane.b32.xlu1 %v2150_v56, %s1878_s9 }
 0x1c1   :  { %v427_v61 = vpop.xlane.xlu1 %426 }
 0x1c2   :  { %v445_v17 = vsub.f32 %v401_v11, %v427_v61  ;;  %v670_v11 = vld [vmem:[%s3421_s5 + $0x10] sm:$0xff]  ;;  %1484 = vrot.lane.b32.xlu0 %v2044_v36, %s1876_s4 }
 0x1c3   :  { %720 = vmatpush.msrb.mxu2 %v670_v11 }
 0x1c4   :  { %v2320_v62 = vpop.eup %1830  ;;  %v455_v63 = vmul.f32 1.442695, %v445_v17 }
 0x1c5   :  { %1660 = vmatmul.msk.f32.gmra.mxu0 %vm418_vm1, %v2320_v62  ;;  %721 = vmatpush.msrb.mxu2 %v668_v58 }
 0x1c6   :  { %1832 = vpow2.f32 %v455_v63  ;;  %1486 = vrot.lane.b32.xlu2 %v2084_v46, %s1876_s4 }
 0x1c7   :  { %1482 = vrot.lane.b32.xlu1 %v2006_v26, %s1876_s4 }
 0x1c9   :  { %v430_v24 = vpop.xlane.xlu1 %429 }
 0x1ca   :  { %v446_v0 = vsub.f32 %v2270_v16, %v430_v24  ;;  %1490 = vrot.lane.b32.xlu0 %v1952_v10, %s1876_s4 }
 0x1cc   :  { %v2331_v1 = vpop.eup %1832  ;;  %v457_v2 = vmul.f32 1.442695, %v446_v0 }
 0x1cd   :  { %1661 = vmatmul.msk.f32.gmra.mxu0 %vm418_vm1, %v2331_v1 }
 0x1ce   :  { %1834 = vpow2.f32 %v457_v2  ;;  %1492 = vrot.lane.b32.xlu2 %v1992_v22, %s1876_s4 }
 0x1cf   :  { %1488 = vrot.lane.b32.xlu1 %v2103_v49, %s1876_s4 }
 0x1d1   :  { %v433_v3 = vpop.xlane.xlu2 %432 }
 0x1d2   :  { %v447_v4 = vsub.f32 %v407_v29, %v433_v3  ;;  %1496 = vrot.lane.b32.xlu0 %v2076_v44, %s1876_s4  ;;  %v1717_v29 = vld [vmem:[%s3421_s5 + $0xb0] sm:$0x1] }
 0x1d3   :  { %1719 = vmatpush.msk.msra.mxu2 %vm495_vm2, %v1717_v29 }
 0x1d4   :  { %v2341_v5 = vpop.eup %1834  ;;  %v459_v25 = vmul.f32 1.442695, %v447_v4 }
 0x1d5   :  { %1662 = vmatmul.msk.f32.gmra.mxu0 %vm418_vm1, %v2341_v5 }
 0x1d6   :  { %1836 = vpow2.f32 %v459_v25  ;;  %1506 = vrot.lane.b32.xlu2 %v2006_v26, %s1877_s20 }
 0x1d7   :  { %1494 = vrot.lane.b32.xlu1 %v2033_v33, %s1876_s4 }
 0x1d9   :  { %v436_v15 = vpop.xlane.xlu2 %435 }
 0x1da   :  { %v448_v16 = vsub.f32 %v2288_v34, %v436_v15  ;;  %1510 = vrot.lane.b32.xlu0 %v2084_v46, %s1877_s20 }
 0x1dc   :  { %v2372_v19 = vpop.eup %1836  ;;  %v461_v20 = vmul.f32 1.442695, %v448_v16 }
 0x1dd   :  { %1663 = vmatmul.msk.f32.gmra.mxu0 %vm418_vm1, %v2372_v19 }
 0x1de   :  { %1838 = vpow2.f32 %v461_v20  ;;  %1512 = vrot.lane.b32.xlu2 %v2103_v49, %s1877_s20 }
 0x1df   :  { %1508 = vrot.lane.b32.xlu1 %v2044_v36, %s1877_s20 }
 0x1e1   :  { %v439_v21 = vpop.xlane.xlu0 %438 }
 0x1e2   :  { %v449_v23 = vsub.f32 %v2292_v38, %v439_v21  ;;  %1516 = vrot.lane.b32.xlu0 %v1992_v22, %s1877_s20 }
 0x1e4   :  { %v2383_v43 = vpop.eup %1838  ;;  %v463_v27 = vmul.f32 1.442695, %v449_v23 }
 0x1e5   :  { %1664 = vmatmul.msk.f32.gmra.mxu0 %vm418_vm1, %v2383_v43 }
 0x1e6   :  { %1840 = vpow2.f32 %v463_v27  ;;  %1518 = vrot.lane.b32.xlu2 %v2033_v33, %s1877_s20 }
 0x1e7   :  { %1514 = vrot.lane.b32.xlu1 %v1952_v10, %s1877_s20 }
 0x1e9   :  { %v442_v13 = vpop.xlane.xlu1 %441 }
 0x1ea   :  { %v450_v50 = vsub.f32 %v2296_v42, %v442_v13  ;;  %1530 = vrot.lane.b32.xlu0 %v2006_v26, %s1878_s9  ;;  %v1692_v26 = vld [vmem:[%s3421_s5 + $0x78] sm:$0x1] }
 0x1eb   :  { %1702 = vmatpush.msk.msra.mxu0 %vm495_vm2, %v1692_v26 }
 0x1ec   :  { %v2394_v48 = vpop.eup %1840  ;;  %v465_v51 = vmul.f32 1.442695, %v450_v50 }
 0x1ed   :  { %1665 = vmatmul.msk.f32.gmra.mxu0 %vm418_vm1, %v2394_v48 }
 0x1ee   :  { %1842 = vpow2.f32 %v465_v51  ;;  %1532 = vrot.lane.b32.xlu2 %v2044_v36, %s1878_s9  ;;  %v1690_v36 = vld [vmem:[%s3421_s5 + $0x68] sm:$0xff] }
 0x1ef   :  { %1520 = vrot.lane.b32.xlu1 %v2076_v44, %s1877_s20  ;;  %995 = vmatpush.msra.mxu0 %v1690_v36 }
 0x1f1   :  { %996 = vmatpush.msra.mxu0 %v1688_v57 }
 0x1f2   :  { %1536 = vrot.lane.b32.xlu0 %v2103_v49, %s1878_s9  ;;  %v1687_v49 = vld [vmem:[%s3421_s5 + $0x50] sm:$0xff] }
 0x1f4   :  { %v2404_v56 = vpop.eup %1842 }
 0x1f5   :  { %1666 = vmatmul.msk.f32.gmra.mxu0 %vm418_vm1, %v2404_v56 }
 0x1f6   :  { %1538 = vrot.lane.b32.xlu2 %v1952_v10, %s1878_s9  ;;  %v1686_v10 = vld [vmem:[%s3421_s5 + $0x48] sm:$0xff] }
 0x1f7   :  { %1534 = vrot.lane.b32.xlu1 %v2084_v46, %s1878_s9  ;;  %v1689_v46 = vld [vmem:[%s3421_s5 + $0x60] sm:$0xff]  ;;  %997 = vmatpush.msra.mxu0 %v1686_v10 }
 0x1f8   :  { %954 = vmatpush.msrb.mxu3 %v1689_v46 }
 0x1fa   :  { %1542 = vrot.lane.b32.xlu0 %v2033_v33, %s1878_s9  ;;  %955 = vmatpush.msrb.mxu3 %v1687_v49 }
 0x1fc   :  { %956 = vmatpush.msrb.mxu3 %v1685_v28 }
 0x1fe   :  { %1544 = vrot.lane.b32.xlu2 %v2076_v44, %s1878_s9  ;;  %v1718_v44 = vld [vmem:[%s3421_s5 + $0xb8] sm:$0x1] }
 0x1ff   :  { %1540 = vrot.lane.b32.xlu1 %v1992_v22, %s1878_s9  ;;  %v669_v22 = vld [vmem:[%s3421_s5 + $0x8] sm:$0xff] }
 0x200   :  { %762 = vmatpush.msra.mxu1 %v669_v22 }
 0x202   :  { %1728 = vmatpush.msk.msrb.mxu1 %vm495_vm2, %v1718_v44 }
 0x23a   :  { %v516_v33 = vpop.f32.mrf.mxu0 }
 0x23b   :  { %1844 = vrcp.f32 %v516_v33  ;;  %v551_v35 = vand.u32 2147483648, %v516_v33  ;;  %v549_v14 = vand.u32 2147483647, %v516_v33  ;;  %vm545_vm4 = vweird.f32 %v516_v33 }
 0x23d   :  { %v552_v40 = vor.u32 1.1754944e-38, %v551_v35  ;;  %vm550_vm6 = vcmp.eq.f32.partialorder %v549_v14, 8.507059e+37  ;;  %v1742_v14 = vld [vmem:[%s3421_s5 + $0xe8] sm:$0xff] }
 0x241   :  { %v1845_v30 = vpop.eup %1844 }
 0x242   :  { %v541_v31 = vmul.f32 %v1845_v30, %v516_v33  ;;  %v519_v32 = vpop.f32.mrf.mxu0  ;;  %vm546_vm3 = vweird.f32 %v1845_v30 }
 0x243   :  { %1846 = vrcp.f32 %v519_v32  ;;  %vm547_vm5 = vmor %vm545_vm4, %vm546_vm3  ;;  %v565_v54 = vand.u32 2147483648, %v519_v32  ;;  %v563_v60 = vand.u32 2147483647, %v519_v32  ;;  %vm559_vm8 = vweird.f32 %v519_v32 }
 0x244   :  { %v542_v34 = vsub.f32 1.0, %v541_v31  ;;  %v1712_v31 = vld [vmem:[%s3421_s5 + $0x88] sm:$0xff] }
 0x245   :  { %v566_v63 = vor.u32 1.1754944e-38, %v565_v54  ;;  %vm564_vm10 = vcmp.eq.f32.partialorder %v563_v60, 8.507059e+37  ;;  %v1737_v60 = vld [vmem:[%s3421_s5 + $0xc0] sm:$0xff] }
 0x246   :  { %v543_v37 = vmul.f32 %v1845_v30, %v542_v34  ;;  %v1744_v34 = vld [vmem:[%s3421_s5 + $0xf8] sm:$0x1] }
 0x247   :  { %1754 = vmatpush.msk.msrb.mxu0 %vm495_vm2, %v1744_v34 }
 0x248   :  { %v544_v38 = vadd.f32 %v1845_v30, %v543_v37  ;;  %v1741_v37 = vld [vmem:[%s3421_s5 + $0xe0] sm:$0xff] }
 0x249   :  { %v1847_v39 = vpop.eup %1846  ;;  %1301 = vmatpush.msrb.mxu0 %v1742_v14 }
 0x24a   :  { %v548_v41 = vsel %vm547_vm5, %v1845_v30, %v544_v38  ;;  %v555_v42 = vmul.f32 %v1847_v39, %v519_v32  ;;  %v522_v45 = vpop.f32.mrf.mxu0  ;;  %vm560_vm7 = vweird.f32 %v1847_v39  ;;  %v1711_v30 = vld [vmem:[%s3421_s5 + $0x80] sm:$0xff]  ;;  %v1743_v32 = vld [vmem:[%s3421_s5 + $0xf0] sm:$0x1] }
 0x24b   :  { %v553_v47 = vsel %vm550_vm6, %v552_v40, %v548_v41  ;;  %1848 = vrcp.f32 %v522_v45  ;;  %vm561_vm9 = vmor %vm559_vm8, %vm560_vm7  ;;  %v579_v6 = vand.u32 2147483648, %v522_v45  ;;  %v577_v8 = vand.u32 2147483647, %v522_v45  ;;  %1745 = vmatpush.msk.msra.mxu3 %vm495_vm2, %v1743_v32  ;;  %v2746_v32 = vpop.permute.xlu1 %800 }
 0x24c   :  { %v2493_v53 = vmul.f32 %v2316_v59, %v553_v47  ;;  %v556_v18 = vsub.f32 1.0, %v555_v42  ;;  %v1715_v59 = vld [vmem:[%s3421_s5 + $0xa0] sm:$0xff]  ;;  %vm573_vm12 = vweird.f32 %v522_v45  ;;  %v1739_v42 = vld [vmem:[%s3421_s5 + $0xd0] sm:$0xff] }
 0x24d   :  { %1107 = vmatpush.msra.mxu2 %v1715_v59  ;;  %v580_v12 = vor.u32 1.1754944e-38, %v579_v6  ;;  %vm578_vm14 = vcmp.eq.f32.partialorder %v577_v8, 8.507059e+37  ;;  %1260 = vmatpush.msra.mxu3 %v1741_v37  ;;  %v1738_v59 = vld [vmem:[%s3421_s5 + $0xc8] sm:$0xff] }
 0x24e   :  { %660 = vst.msk [vmem:[%s3422_s7] sm:$0xff] %vm418_vm1, %v2493_v53  ;;  %v557_v55 = vmul.f32 %v1847_v39, %v556_v18  ;;  %1668 = vmatmul.msk.f32.vlgmr.msrb.gmra.mxu2 %vm418_vm1, %v2493_v53  ;;  %1677 = vmatmul.msk.f32.vlgmr.msra.gmra.mxu1 %vm418_vm1, %v2493_v53 }
 0x24f   :  { %1694 = vmatmul.msk.f32.vlgmr.msrb.gmra.mxu3 %vm418_vm1, %v2493_v53  ;;  %1703 = vmatmul.msk.f32.vlgmr.msra.gmra.mxu0 %vm418_vm1, %v2493_v53 }
 0x250   :  { %v558_v61 = vadd.f32 %v1847_v39, %v557_v55  ;;  %1261 = vmatpush.msra.mxu3 %v1739_v42 }
 0x251   :  { %v1849_v17 = vpop.eup %1848 }
 0x252   :  { %v562_v24 = vsel %vm561_vm9, %v1847_v39, %v558_v61  ;;  %v569_v0 = vmul.f32 %v1849_v17, %v522_v45  ;;  %v525_v2 = vpop.f32.mrf.mxu0  ;;  %vm574_vm11 = vweird.f32 %v1849_v17  ;;  %v1740_v45 = vld [vmem:[%s3421_s5 + $0xd8] sm:$0xff]  ;;  %1262 = vmatpush.msra.mxu3 %v1737_v60 }
 0x253   :  { %v567_v3 = vsel %vm564_vm10, %v566_v63, %v562_v24  ;;  %1850 = vrcp.f32 %v525_v2  ;;  %vm575_vm13 = vmor %vm573_vm12, %vm574_vm11  ;;  %v593_v13 = vand.u32 2147483648, %v525_v2  ;;  %v591_v51 = vand.u32 2147483647, %v525_v2  ;;  %1302 = vmatpush.msrb.mxu0 %v1740_v45  ;;  %v1770_v63 = vld [vmem:[%s3421_s5 + $0x138] sm:$0x1]  ;;  %v2768_v37 = vpop.permute.xlu1 %808 }
 0x254   :  { %v2512_v4 = vmul.f32 %v2320_v62, %v567_v3  ;;  %v570_v25 = vsub.f32 1.0, %v569_v0  ;;  %v1716_v62 = vld [vmem:[%s3421_s5 + $0xa8] sm:$0xff]  ;;  %vm587_vm3 = vweird.f32 %v525_v2  ;;  %3432 = vst [vmem:[#allocation4_spill] sm:$0xff] %v2768_v37 }
 0x255   :  { %1148 = vmatpush.msrb.mxu1 %v1716_v62  ;;  %v594_v46 = vor.u32 1.1754944e-38, %v593_v13  ;;  %vm592_vm5 = vcmp.eq.f32.partialorder %v591_v51, 8.507059e+37  ;;  %1303 = vmatpush.msrb.mxu0 %v1738_v59 }
 0x256   :  { %661 = vst.msk [vmem:[%s3422_s7 + $0x8] sm:$0xff] %vm418_vm1, %v2512_v4  ;;  %v571_v7 = vmul.f32 %v1849_v17, %v570_v25  ;;  %1669 = vmatmul.msk.f32.gmra.mxu2 %vm418_vm1, %v2512_v4  ;;  %1678 = vmatmul.msk.f32.gmra.mxu1 %vm418_vm1, %v2512_v4 }
 0x257   :  { %1695 = vmatmul.msk.f32.gmra.mxu3 %vm418_vm1, %v2512_v4  ;;  %1704 = vmatmul.msk.f32.gmra.mxu0 %vm418_vm1, %v2512_v4 }
 0x258   :  { %v572_v9 = vadd.f32 %v1849_v17, %v571_v7 }
 0x259   :  { %v1851_v11 = vpop.eup %1850 }
 0x25a   :  { %v576_v15 = vsel %vm575_vm13, %v1849_v17, %v572_v9  ;;  %v583_v16 = vmul.f32 %v1851_v11, %v525_v2  ;;  %v528_v20 = vpop.f32.mrf.mxu0  ;;  %vm588_vm15 = vweird.f32 %v1851_v11  ;;  %v1769_v17 = vld [vmem:[%s3421_s5 + $0x130] sm:$0x1] }
 0x25b   :  { %v581_v21 = vsel %vm578_vm14, %v580_v12, %v576_v15  ;;  %1852 = vrcp.f32 %v528_v20  ;;  %vm589_vm4 = vmor %vm587_vm3, %vm588_vm15  ;;  %v607_v10 = vand.u32 2147483648, %v528_v20  ;;  %v605_v29 = vand.u32 2147483647, %v528_v20 }
 0x25c   :  { %v2531_v23 = vmul.f32 %v2331_v1, %v581_v21  ;;  %v584_v27 = vsub.f32 1.0, %v583_v16  ;;  %v1713_v1 = vld [vmem:[%s3421_s5 + $0x90] sm:$0xff]  ;;  %vm601_vm7 = vweird.f32 %v528_v20 }
 0x25d   :  { %1108 = vmatpush.msra.mxu2 %v1713_v1  ;;  %v608_v38 = vor.u32 1.1754944e-38, %v607_v10  ;;  %vm606_vm9 = vcmp.eq.f32.partialorder %v605_v29, 8.507059e+37  ;;  %v1763_v10 = vld [vmem:[%s3421_s5 + $0x100] sm:$0xff]  ;;  %v2722_v29 = vpop.permute.xlu2 %796 }
 0x25e   :  { %662 = vst.msk [vmem:[%s3422_s7 + $0x10] sm:$0xff] %vm418_vm1, %v2531_v23  ;;  %v585_v50 = vmul.f32 %v1851_v11, %v584_v27  ;;  %1670 = vmatmul.msk.f32.gmra.mxu2 %vm418_vm1, %v2531_v23  ;;  %1679 = vmatmul.msk.f32.gmra.mxu1 %vm418_vm1, %v2531_v23 }
 0x25f   :  { %1696 = vmatmul.msk.f32.gmra.mxu3 %vm418_vm1, %v2531_v23  ;;  %1705 = vmatmul.msk.f32.gmra.mxu0 %vm418_vm1, %v2531_v23 }
 0x260   :  { %v586_v52 = vadd.f32 %v1851_v11, %v585_v50  ;;  %1109 = vmatpush.msra.mxu2 %v1711_v30 }
 0x261   :  { %v1853_v26 = vpop.eup %1852 }
 0x262   :  { %v590_v36 = vsel %vm589_vm4, %v1851_v11, %v586_v52  ;;  %v597_v49 = vmul.f32 %v1853_v26, %v528_v20  ;;  %v2549_v57 = vpop.f32.mrf.mxu0  ;;  %vm602_vm6 = vweird.f32 %v1853_v26  ;;  %1771 = vmatpush.msk.msrb.mxu2 %vm495_vm2, %v1769_v17 }
 0x263   :  { %v595_v58 = vsel %vm592_vm5, %v594_v46, %v590_v36  ;;  %1854 = vrcp.f32 %v2549_v57  ;;  %vm603_vm8 = vmor %vm601_vm7, %vm602_vm6  ;;  %v621_v55 = vand.u32 2147483648, %v2549_v57  ;;  %v619_v61 = vand.u32 2147483647, %v2549_v57 }
 0x264   :  { %v2553_v22 = vmul.f32 %v2341_v5, %v595_v58  ;;  %v598_v28 = vsub.f32 1.0, %v597_v49  ;;  %v1714_v5 = vld [vmem:[%s3421_s5 + $0x98] sm:$0xff]  ;;  %vm615_vm11 = vweird.f32 %v2549_v57 }
 0x265   :  { %1149 = vmatpush.msrb.mxu1 %v1714_v5  ;;  %v622_v2 = vor.u32 1.1754944e-38, %v621_v55  ;;  %vm620_vm13 = vcmp.eq.f32.partialorder %v619_v61, 8.507059e+37  ;;  %v2728_v5 = vpop.permute.xlu0 %798  ;;  %v2734_v30 = vpop.permute.xlu2 %802 }
 0x266   :  { %663 = vst.msk [vmem:[%s3422_s7 + $0x18] sm:$0xff] %vm418_vm1, %v2553_v22  ;;  %v599_v33 = vmul.f32 %v1853_v26, %v598_v28  ;;  %1671 = vmatmul.msk.f32.gmra.mxu2 %vm418_vm1, %v2553_v22  ;;  %1680 = vmatmul.msk.f32.gmra.mxu1 %vm418_vm1, %v2553_v22  ;;  %v1766_v28 = vld [vmem:[%s3421_s5 + $0x118] sm:$0xff] }
 0x267   :  { %1697 = vmatmul.msk.f32.gmra.mxu3 %vm418_vm1, %v2553_v22  ;;  %1706 = vmatmul.msk.f32.gmra.mxu0 %vm418_vm1, %v2553_v22 }
 0x268   :  { %v600_v35 = vadd.f32 %v1853_v26, %v599_v33  ;;  %1150 = vmatpush.msrb.mxu1 %v1712_v31  ;;  %v1764_v33 = vld [vmem:[%s3421_s5 + $0x108] sm:$0xff] }
 0x269   :  { %v1855_v44 = vpop.eup %1854 }
 0x26a   :  { %v604_v39 = vsel %vm603_vm8, %v1853_v26, %v600_v35  ;;  %v611_v40 = vmul.f32 %v1855_v44, %v2549_v57  ;;  %v534_v41 = vpop.f32.mrf.mxu0  ;;  %vm616_vm10 = vweird.f32 %v1855_v44  ;;  %1780 = vmatpush.msk.msra.mxu1 %vm495_vm2, %v1770_v63  ;;  %v1768_v26 = vld [vmem:[%s3421_s5 + $0x128] sm:$0xff]  ;;  %vm876_vm8 = vcmask 523264  }
 0x26b   :  { %v609_v47 = vsel %vm606_vm9, %v608_v38, %v604_v39  ;;  %1856 = vrcp.f32 %v534_v41  ;;  %vm617_vm12 = vmor %vm615_vm11, %vm616_vm10  ;;  %v635_v9 = vand.u32 2147483648, %v534_v41  ;;  %v633_v12 = vand.u32 2147483647, %v534_v41  ;;  %v2782_v38 = vpop.permute.xlu1 %822 }
 0x26c   :  { %v2600_v18 = vmul.f32 %v2372_v19, %v609_v47  ;;  %v612_v54 = vsub.f32 1.0, %v611_v40  ;;  %vm629_vm2 = vweird.f32 %v534_v41  ;;  %1454 = vmatpush.msra.mxu1 %v1768_v26  ;;  %vm885_vm9 = vcmask 785408  }
 0x26d   :  { %v636_v16 = vor.u32 1.1754944e-38, %v635_v9  ;;  %vm634_vm3 = vcmp.eq.f32.partialorder %v633_v12, 8.507059e+37  ;;  %v2744_v31 = vpop.permute.xlu0 %804  ;;  %v2756_v34 = vpop.permute.xlu2 %806 }
 0x26e   :  { %664 = vst.msk [vmem:[%s3422_s7 + $0x20] sm:$0xff] %vm418_vm1, %v2600_v18  ;;  %v613_v19 = vmul.f32 %v1855_v44, %v612_v54  ;;  %1672 = vmatmul.msk.f32.gmra.mxu2 %vm418_vm1, %v2600_v18  ;;  %1681 = vmatmul.msk.f32.gmra.mxu1 %vm418_vm1, %v2600_v18 }
 0x26f   :  { %1698 = vmatmul.msk.f32.gmra.mxu3 %vm418_vm1, %v2600_v18  ;;  %1707 = vmatmul.msk.f32.gmra.mxu0 %vm418_vm1, %v2600_v18  ;;  %3430 = vst [vmem:[#allocation2_spill] sm:$0xff] %v2744_v31 }
 0x270   :  { %v614_v24 = vadd.f32 %v1855_v44, %v613_v19  ;;  %1455 = vmatpush.msra.mxu1 %v1766_v28  ;;  %3431 = vst [vmem:[#allocation3_spill] sm:$0xff] %v2756_v34 }
 0x271   :  { %v1857_v0 = vpop.eup %1856 }
 0x272   :  { %v618_v3 = vsel %vm617_vm12, %v1855_v44, %v614_v24  ;;  %v625_v25 = vmul.f32 %v1857_v0, %v534_v41  ;;  %v537_v6 = vpop.f32.mrf.mxu0  ;;  %vm630_vm14 = vweird.f32 %v1857_v0  ;;  %1456 = vmatpush.msra.mxu1 %v1764_v33 }
 0x273   :  { %v623_v7 = vsel %vm620_vm13, %v622_v2, %v618_v3  ;;  %1858 = vrcp.f32 %v537_v6  ;;  %vm631_vm15 = vmor %vm629_vm2, %vm630_vm14  ;;  %v649_v51 = vand.u32 2147483648, %v537_v6  ;;  %v647_v52 = vand.u32 2147483647, %v537_v6  ;;  %v2802_v55 = vpop.permute.xlu1 %828  ;;  %v2837_v3 = vld [vmem:[%s3417_s0 + $0x30] sm:$0xff] }
 0x274   :  { %v2633_v8 = vmul.f32 %v2383_v43, %v623_v7  ;;  %v626_v62 = vsub.f32 1.0, %v625_v25  ;;  %vm643_vm5 = vweird.f32 %v537_v6  ;;  %v871_v25 = vsel %vm87_vm0, %v2837_v3, %v2734_v30 }
 0x275   :  { %v650_v36 = vor.u32 1.1754944e-38, %v649_v51  ;;  %vm648_vm7 = vcmp.eq.f32.partialorder %v647_v52, 8.507059e+37  ;;  %v2758_v35 = vpop.permute.xlu0 %810  ;;  %v2770_v14 = vpop.permute.xlu2 %820  ;;  %v2870_v51 = vld [vmem:[%s3417_s0 + $0x40] sm:$0xff] }
 0x276   :  { %665 = vst.msk [vmem:[%s3422_s7 + $0x28] sm:$0xff] %vm418_vm1, %v2633_v8  ;;  %v627_v11 = vmul.f32 %v1857_v0, %v626_v62  ;;  %1673 = vmatmul.msk.f32.gmra.mxu2 %vm418_vm1, %v2633_v8  ;;  %1682 = vmatmul.msk.f32.gmra.mxu1 %vm418_vm1, %v2633_v8 }
 0x277   :  { %1699 = vmatmul.msk.f32.gmra.mxu3 %vm418_vm1, %v2633_v8  ;;  %1708 = vmatmul.msk.f32.gmra.mxu0 %vm418_vm1, %v2633_v8 }
 0x278   :  { %v628_v43 = vadd.f32 %v1857_v0, %v627_v11 }
 0x279   :  { %v1859_v15 = vpop.eup %1858 }
 0x27a   :  { %v632_v20 = vsel %vm631_vm15, %v1857_v0, %v628_v43  ;;  %v639_v21 = vmul.f32 %v1859_v15, %v537_v6  ;;  %vm644_vm4 = vweird.f32 %v1859_v15 }
 0x27b   :  { %v637_v27 = vsel %vm634_vm3, %v636_v16, %v632_v20  ;;  %vm645_vm6 = vmor %vm643_vm5, %vm644_vm4  ;;  %v2822_v24 = vpop.permute.xlu1 %834 }
 0x27c   :  { %v2649_v13 = vmul.f32 %v2394_v48, %v637_v27  ;;  %v640_v50 = vsub.f32 1.0, %v639_v21  ;;  %v1767_v48 = vld [vmem:[%s3421_s5 + $0x120] sm:$0xff] }
 0x27d   :  { %1413 = vmatpush.msrb.mxu2 %v1767_v48  ;;  %v2772_v44 = vpop.permute.xlu0 %824  ;;  %v2786_v40 = vpop.permute.xlu2 %826 }
 0x27e   :  { %666 = vst.msk [vmem:[%s3422_s7 + $0x30] sm:$0xff] %vm418_vm1, %v2649_v13  ;;  %v641_v1 = vmul.f32 %v1859_v15, %v640_v50  ;;  %1674 = vmatmul.msk.f32.gmra.mxu2 %vm418_vm1, %v2649_v13  ;;  %1683 = vmatmul.msk.f32.gmra.mxu1 %vm418_vm1, %v2649_v13  ;;  %v880_v11 = vsel %vm876_vm8, %v871_v25, %v2786_v40 }
 0x27f   :  { %1700 = vmatmul.msk.f32.gmra.mxu3 %vm418_vm1, %v2649_v13  ;;  %1709 = vmatmul.msk.f32.gmra.mxu0 %vm418_vm1, %v2649_v13  ;;  %3433 = vst [vmem:[#allocation5_spill] sm:$0xff] %v2786_v40 }
 0x280   :  { %v642_v46 = vadd.f32 %v1859_v15, %v641_v1 }
 0x282   :  { %v646_v49 = vsel %vm645_vm6, %v1859_v15, %v642_v46 }
 0x283   :  { %v651_v57 = vsel %vm648_vm7, %v650_v36, %v646_v49  ;;  %v2861_v20 = vpop.permute.xlu1 %848 }
 0x284   :  { %v2671_v58 = vmul.f32 %v2404_v56, %v651_v57  ;;  %v1765_v56 = vld [vmem:[%s3421_s5 + $0x110] sm:$0xff] }
 0x285   :  { %1414 = vmatpush.msrb.mxu2 %v1765_v56  ;;  %v2794_v42 = vpop.permute.xlu0 %830  ;;  %v2806_v59 = vpop.permute.xlu2 %832 }
 0x286   :  { %667 = vst.msk [vmem:[%s3422_s7 + $0x38] sm:$0xff] %vm418_vm1, %v2671_v58  ;;  %1675 = vmatmul.msk.f32.gmra.mxu2 %vm418_vm1, %v2671_v58  ;;  %1684 = vmatmul.msk.f32.gmra.mxu1 %vm418_vm1, %v2671_v58 }
 0x287   :  { %1701 = vmatmul.msk.f32.gmra.mxu3 %vm418_vm1, %v2671_v58  ;;  %1710 = vmatmul.msk.f32.gmra.mxu0 %vm418_vm1, %v2671_v58  ;;  %3434 = vst [vmem:[#allocation6_spill] sm:$0xff] %v2794_v42 }
 0x288   :  { %1415 = vmatpush.msrb.mxu2 %v1763_v10  ;;  %3435 = vst [vmem:[#allocation7_spill] sm:$0xff] %v2806_v59 }
 0x28d   :  { %v2828_v0 = vpop.permute.xlu2 %846 }
 0x28e   :  { %1720 = vmatmul.msk.f32.vlgmr.msra.gmra.mxu2 %vm418_vm1, %v2493_v53  ;;  %1729 = vmatmul.msk.f32.vlgmr.msrb.gmra.mxu1 %vm418_vm1, %v2493_v53 }
 0x28f   :  { %1746 = vmatmul.msk.f32.vlgmr.msra.gmra.mxu3 %vm418_vm1, %v2493_v53  ;;  %1755 = vmatmul.msk.f32.vlgmr.msrb.gmra.mxu0 %vm418_vm1, %v2493_v53 }
 0x295   :  { %v2865_v50 = vpop.permute.xlu2 %852 }
 0x296   :  { %1721 = vmatmul.msk.f32.gmra.mxu2 %vm418_vm1, %v2512_v4  ;;  %1730 = vmatmul.msk.f32.gmra.mxu1 %vm418_vm1, %v2512_v4  ;;  %v1027_v48 = vsel %vm87_vm0, %v2865_v50, %v2870_v51 }
 0x297   :  { %1747 = vmatmul.msk.f32.gmra.mxu3 %vm418_vm1, %v2512_v4  ;;  %1756 = vmatmul.msk.f32.gmra.mxu0 %vm418_vm1, %v2512_v4  ;;  %v1035_v10 = vsel %vm876_vm8, %v1027_v48, %v2744_v31 }
 0x29e   :  { %1722 = vmatmul.msk.f32.gmra.mxu2 %vm418_vm1, %v2531_v23  ;;  %1731 = vmatmul.msk.f32.gmra.mxu1 %vm418_vm1, %v2531_v23 }
 0x29f   :  { %1748 = vmatmul.msk.f32.gmra.mxu3 %vm418_vm1, %v2531_v23  ;;  %1757 = vmatmul.msk.f32.gmra.mxu0 %vm418_vm1, %v2531_v23 }
 0x2a6   :  { %1723 = vmatmul.msk.f32.gmra.mxu2 %vm418_vm1, %v2553_v22  ;;  %1732 = vmatmul.msk.f32.gmra.mxu1 %vm418_vm1, %v2553_v22 }
 0x2a7   :  { %1749 = vmatmul.msk.f32.gmra.mxu3 %vm418_vm1, %v2553_v22  ;;  %1758 = vmatmul.msk.f32.gmra.mxu0 %vm418_vm1, %v2553_v22 }
 0x2ae   :  { %1724 = vmatmul.msk.f32.gmra.mxu2 %vm418_vm1, %v2600_v18  ;;  %1733 = vmatmul.msk.f32.gmra.mxu1 %vm418_vm1, %v2600_v18 }
 0x2af   :  { %1750 = vmatmul.msk.f32.gmra.mxu3 %vm418_vm1, %v2600_v18  ;;  %1759 = vmatmul.msk.f32.gmra.mxu0 %vm418_vm1, %v2600_v18 }
 0x2b6   :  { %1725 = vmatmul.msk.f32.gmra.mxu2 %vm418_vm1, %v2633_v8  ;;  %1734 = vmatmul.msk.f32.gmra.mxu1 %vm418_vm1, %v2633_v8 }
 0x2b7   :  { %1751 = vmatmul.msk.f32.gmra.mxu3 %vm418_vm1, %v2633_v8  ;;  %1760 = vmatmul.msk.f32.gmra.mxu0 %vm418_vm1, %v2633_v8 }
 0x2be   :  { %1726 = vmatmul.msk.f32.gmra.mxu2 %vm418_vm1, %v2649_v13  ;;  %1735 = vmatmul.msk.f32.gmra.mxu1 %vm418_vm1, %v2649_v13 }
 0x2bf   :  { %1752 = vmatmul.msk.f32.gmra.mxu3 %vm418_vm1, %v2649_v13  ;;  %1761 = vmatmul.msk.f32.gmra.mxu0 %vm418_vm1, %v2649_v13 }
 0x2c6   :  { %1727 = vmatmul.msk.f32.gmra.mxu2 %vm418_vm1, %v2671_v58  ;;  %1736 = vmatmul.msk.f32.gmra.mxu1 %vm418_vm1, %v2671_v58 }
 0x2c7   :  { %1753 = vmatmul.msk.f32.gmra.mxu3 %vm418_vm1, %v2671_v58  ;;  %1762 = vmatmul.msk.f32.gmra.mxu0 %vm418_vm1, %v2671_v58 }
 0x2cb   :  { %v2784_v39 = vpop.f32.mrf.mxu1 }
 0x2cc   :  { %v2788_v41 = vpop.f32.mrf.mxu0 }
 0x2ce   :  { %1772 = vmatmul.msk.f32.vlgmr.msrb.gmra.mxu2 %vm418_vm1, %v2493_v53  ;;  %1781 = vmatmul.msk.f32.vlgmr.msra.gmra.mxu1 %vm418_vm1, %v2493_v53  ;;  %v2812_v53 = vpop.permute.xlu0 %844 }
 0x2d1   :  { %v2796_v45 = vpop.f32.mrf.mxu2 }
 0x2d2   :  { %v2798_v47 = vpop.f32.mrf.mxu3 }
 0x2d3   :  { %v2800_v54 = vpop.f32.mrf.mxu1 }
 0x2d4   :  { %v2804_v60 = vpop.f32.mrf.mxu0 }
 0x2d6   :  { %1773 = vmatmul.msk.f32.gmra.mxu2 %vm418_vm1, %v2512_v4  ;;  %1782 = vmatmul.msk.f32.gmra.mxu1 %vm418_vm1, %v2512_v4  ;;  %v2832_v2 = vpop.permute.xlu0 %850 }
 0x2d7   :  { %v889_v16 = vsel %vm885_vm9, %v880_v11, %v2832_v2 }
 0x2d9   :  { %v2814_v19 = vpop.f32.mrf.mxu2 }
 0x2da   :  { %v2816_v61 = vpop.f32.mrf.mxu3 }
 0x2db   :  { %v2818_v17 = vpop.f32.mrf.mxu1 }
 0x2dc   :  { %v2820_v63 = vpop.f32.mrf.mxu0 }
 0x2de   :  { %1774 = vmatmul.msk.f32.gmra.mxu2 %vm418_vm1, %v2531_v23  ;;  %1783 = vmatmul.msk.f32.gmra.mxu1 %vm418_vm1, %v2531_v23  ;;  %v1026_v23 = vsel %vm87_vm0, %v2832_v2, %v2837_v3 }
 0x2df   :  { %v1034_v43 = vsel %vm876_vm8, %v1026_v23, %v2734_v30  ;;  %v1043_v23 = vsel %vm885_vm9, %v1035_v10, %v2802_v55  ;;  %v2932_v10 = vld [vmem:[%s3417_s0 + $0x60] sm:$0xff] }
 0x2e0   :  { %v1042_v21 = vsel %vm885_vm9, %v1034_v43, %v2786_v40 }
 0x2e1   :  { %v2830_v4 = vpop.f32.mrf.mxu2 }
 0x2e2   :  { %3436 = vst [vmem:[#allocation8_spill] sm:$0xff] %v2830_v4  ;;  %v2842_v6 = vpop.f32.mrf.mxu3 }
 0x2e3   :  { %3437 = vst [vmem:[#allocation9_spill] sm:$0xff] %v2842_v6  ;;  %v773_v7 = vpop.f32.mrf.mxu1 }
 0x2e4   :  { %v901_v62 = vmul.f32 %v2837_v3, %v773_v7  ;;  %v1008_v9 = vpop.f32.mrf.mxu0 }
 0x2e5   :  { %v1054_v12 = vmul.f32 %v1008_v9, %v2832_v2  ;;  %v2901_v9 = vld [vmem:[%s3417_s0 + $0x50] sm:$0xff] }
 0x2e6   :  { %1775 = vmatmul.msk.f32.gmra.mxu2 %vm418_vm1, %v2553_v22  ;;  %1784 = vmatmul.msk.f32.gmra.mxu1 %vm418_vm1, %v2553_v22  ;;  %v872_v22 = vsel %vm87_vm0, %v2870_v51, %v2744_v31 }
 0x2e7   :  { %v2857_v15 = vadd.f32 %v1054_v12, %v901_v62  ;;  %v881_v57 = vsel %vm876_vm8, %v872_v22, %v2802_v55  ;;  %v2896_v62 = vpop.permute.xlu1 %854 }
 0x2e8   :  { %v890_v25 = vsel %vm885_vm9, %v881_v57, %v2865_v50  ;;  %v1028_v43 = vsel %vm87_vm0, %v2896_v62, %v2901_v9 }
 0x2e9   :  { %3438 = vst [vmem:[#allocation10_spill] sm:$0xff] %v2857_v15  ;;  %v732_v27 = vpop.f32.mrf.mxu2  ;;  %v1036_v48 = vsel %vm876_vm8, %v1028_v43, %v2756_v34 }
 0x2ea   :  { %v900_v1 = vmul.f32 %v889_v16, %v732_v27  ;;  %v967_v52 = vpop.f32.mrf.mxu3 }
 0x2eb   :  { %v1053_v26 = vmul.f32 %v1042_v21, %v967_v52  ;;  %v776_v46 = vpop.f32.mrf.mxu1 }
 0x2ec   :  { %v903_v36 = vmul.f32 %v2870_v51, %v776_v46  ;;  %v1011_v49 = vpop.f32.mrf.mxu0 }
 0x2ed   :  { %v2881_v56 = vadd.f32 %v1053_v26, %v900_v1  ;;  %v1056_v28 = vmul.f32 %v1011_v49, %v2865_v50  ;;  %v1044_v49 = vsel %vm885_vm9, %v1036_v48, %v2794_v42 }
 0x2ee   :  { %1776 = vmatmul.msk.f32.gmra.mxu2 %vm418_vm1, %v2600_v18  ;;  %1785 = vmatmul.msk.f32.gmra.mxu1 %vm418_vm1, %v2600_v18  ;;  %v873_v18 = vsel %vm87_vm0, %v2901_v9, %v2756_v34 }
 0x2ef   :  { %v2890_v33 = vadd.f32 %v1056_v28, %v903_v36  ;;  %v882_v1 = vsel %vm876_vm8, %v873_v18, %v2794_v42  ;;  %v2927_v28 = vpop.permute.xlu0 %856 }
 0x2f0   :  { %v891_v46 = vsel %vm885_vm9, %v882_v1, %v2896_v62 }
 0x2f1   :  { %3439 = vst [vmem:[#allocation11_spill] sm:$0xff] %v2890_v33  ;;  %v735_v7 = vpop.f32.mrf.mxu2 }
 0x2f2   :  { %v902_v11 = vmul.f32 %v890_v25, %v735_v7  ;;  %v970_v12 = vpop.f32.mrf.mxu3  ;;  %v1029_v7 = vsel %vm87_vm0, %v2927_v28, %v2932_v10 }
 0x2f3   :  { %v1055_v16 = vmul.f32 %v1043_v23, %v970_v12  ;;  %v779_v21 = vpop.f32.mrf.mxu1 }
 0x2f4   :  { %v905_v27 = vmul.f32 %v2901_v9, %v779_v21  ;;  %v1014_v22 = vpop.f32.mrf.mxu0 }
 0x2f5   :  { %v2912_v52 = vadd.f32 %v1055_v16, %v902_v11  ;;  %v1058_v26 = vmul.f32 %v1014_v22, %v2896_v62  ;;  %v1037_v22 = vsel %vm876_vm8, %v1029_v7, %v2768_v37 }
 0x2f6   :  { %1777 = vmatmul.msk.f32.gmra.mxu2 %vm418_vm1, %v2633_v8  ;;  %1786 = vmatmul.msk.f32.gmra.mxu1 %vm418_vm1, %v2633_v8  ;;  %v874_v8 = vsel %vm87_vm0, %v2932_v10, %v2768_v37 }
 0x2f7   :  { %v2923_v36 = vadd.f32 %v1058_v26, %v905_v27  ;;  %v883_v16 = vsel %vm876_vm8, %v874_v8, %v2806_v59  ;;  %v1045_v26 = vsel %vm885_vm9, %v1037_v22, %v2806_v59 }
 0x2f8   :  { %v892_v48 = vsel %vm885_vm9, %v883_v16, %v2927_v28 }
 0x2f9   :  { %3440 = vst [vmem:[#allocation12_spill] sm:$0xff] %v2923_v36  ;;  %v738_v57 = vpop.f32.mrf.mxu2  ;;  %v1332_v36 = vsel %vm87_vm0, %v2734_v30, %v2786_v40 }
 0x2fa   :  { %v904_v25 = vmul.f32 %v891_v46, %v738_v57  ;;  %v973_v23 = vpop.f32.mrf.mxu3  ;;  %v2963_v57 = vld [vmem:[%s3417_s0 + $0x70] sm:$0xff]  ;;  %v1340_v15 = vsel %vm876_vm8, %v1332_v36, %v2832_v2 }
 0x2fb   :  { %v1057_v18 = vmul.f32 %v1044_v49, %v973_v23  ;;  %v782_v11 = vpop.f32.mrf.mxu1  ;;  %v2958_v49 = vpop.permute.xlu2 %858 }
 0x2fc   :  { %v907_v12 = vmul.f32 %v2932_v10, %v782_v11  ;;  %v1017_v43 = vpop.f32.mrf.mxu0  ;;  %v1030_v23 = vsel %vm87_vm0, %v2958_v49, %v2963_v57 }
 0x2fd   :  { %v2943_v21 = vadd.f32 %v1057_v18, %v904_v25  ;;  %v1060_v27 = vmul.f32 %v1017_v43, %v2927_v28  ;;  %v1038_v22 = vsel %vm876_vm8, %v1030_v23, %v2758_v35 }
 0x2fe   :  { %1778 = vmatmul.msk.f32.gmra.mxu2 %vm418_vm1, %v2649_v13  ;;  %1787 = vmatmul.msk.f32.gmra.mxu1 %vm418_vm1, %v2649_v13  ;;  %v875_v13 = vsel %vm87_vm0, %v2963_v57, %v2758_v35 }
 0x2ff   :  { %v2952_v1 = vadd.f32 %v1060_v27, %v907_v12  ;;  %v884_v43 = vsel %vm876_vm8, %v875_v13, %v2822_v24 }
 0x301   :  { %3441 = vst [vmem:[#allocation13_spill] sm:$0xff] %v2952_v1  ;;  %v741_v46 = vpop.f32.mrf.mxu2 }
 0x302   :  { %v906_v8 = vmul.f32 %v892_v48, %v741_v46  ;;  %v976_v25 = vpop.f32.mrf.mxu3  ;;  %v1046_v46 = vsel %vm885_vm9, %v1038_v22, %v2822_v24 }
 0x303   :  { %v1059_v7 = vmul.f32 %v1045_v26, %v976_v25  ;;  %v785_v18 = vpop.f32.mrf.mxu1  ;;  %v893_v26 = vsel %vm885_vm9, %v884_v43, %v2958_v49 }
 0x304   :  { %v909_v11 = vmul.f32 %v2963_v57, %v785_v18  ;;  %v1020_v12 = vpop.f32.mrf.mxu0 }
 0x305   :  { %v2974_v16 = vadd.f32 %v1059_v7, %v906_v8  ;;  %v1062_v27 = vmul.f32 %v1020_v12, %v2958_v49 }
 0x306   :  { %1779 = vmatmul.msk.f32.gmra.mxu2 %vm418_vm1, %v2671_v58  ;;  %1788 = vmatmul.msk.f32.gmra.mxu1 %vm418_vm1, %v2671_v58 }
 0x307   :  { %v2983_v48 = vadd.f32 %v1062_v27, %v909_v11  ;;  %v3003_v27 = vpop.permute.xlu0 %1484 }
 0x309   :  { %3442 = vst [vmem:[#allocation14_spill] sm:$0xff] %v2983_v48  ;;  %v744_v13 = vpop.f32.mrf.mxu2 }
 0x30a   :  { %v908_v8 = vmul.f32 %v893_v26, %v744_v13  ;;  %v979_v25 = vpop.f32.mrf.mxu3  ;;  %v3011_v13 = vpop.permute.xlu1 %1482 }
 0x30b   :  { %v1061_v7 = vmul.f32 %v1046_v46, %v979_v25  ;;  %v2989_v18 = vpop.f32.mrf.mxu1  ;;  %v1179_v25 = vsel %vm87_vm0, %v2786_v40, %v2832_v2  ;;  %v1180_v40 = vsel %vm87_vm0, %v2802_v55, %v2865_v50  ;;  %v1333_v2 = vsel %vm87_vm0, %v2744_v31, %v2802_v55 }
 0x30c   :  { %v1187_v33 = vsel %vm876_vm8, %v1179_v25, %v2837_v3 }
 0x30d   :  { %v2991_v23 = vadd.f32 %v1061_v7, %v908_v8  ;;  %v3018_v7 = vpop.permute.xlu2 %1486 }
 0x30e   :  { %3447 = vst [vmem:[#allocation19_spill] sm:$0xff] %v3018_v7  ;;  %v1348_v7 = vsel %vm885_vm9, %v1340_v15, %v2837_v3  ;;  %v1188_v3 = vsel %vm876_vm8, %v1180_v40, %v2870_v51  ;;  %v1181_v40 = vsel %vm87_vm0, %v2794_v42, %v2896_v62 }
 0x30f   :  { %v3020_v48 = vpop.permute.xlu0 %1490 }
 0x310   :  { %3448 = vst [vmem:[#allocation20_spill] sm:$0xff] %v3020_v48 }
 0x311   :  { %v2993_v12 = vpop.f32.mrf.mxu2 }
 0x312   :  { %v2995_v1 = vpop.f32.mrf.mxu3  ;;  %v3039_v4 = vpop.permute.xlu1 %1488 }
 0x313   :  { %v2997_v58 = vpop.f32.mrf.mxu1 }
 0x317   :  { %v3050_v15 = vpop.permute.xlu0 %1496 }
 0x318   :  { %3451 = vst [vmem:[#allocation23_spill] sm:$0xff] %v3050_v15 }
 0x319   :  { %v2999_v11 = vpop.f32.mrf.mxu2 }
 0x31a   :  { %v3001_v43 = vpop.f32.mrf.mxu3 }
 0x31b   :  { %3443 = vst [vmem:[#allocation15_spill] sm:$0xff] %v3001_v43  ;;  %v3005_v22 = vpop.f32.mrf.mxu1 }
 0x321   :  { %v3007_v26 = vpop.f32.mrf.mxu2 }
 0x322   :  { %3444 = vst [vmem:[#allocation16_spill] sm:$0xff] %v3007_v26  ;;  %v3009_v46 = vpop.f32.mrf.mxu3 }
 0x323   :  { %3445 = vst [vmem:[#allocation17_spill] sm:$0xff] %v3009_v46  ;;  %v3013_v8 = vpop.f32.mrf.mxu1 }
 0x324   :  { %3446 = vst [vmem:[#allocation18_spill] sm:$0xff] %v3013_v8  ;;  %v1195_v8 = vsel %vm885_vm9, %v1187_v33, %v2734_v30  ;;  %v3044_v33 = vpop.permute.xlu2 %1492 }
 0x325   :  { %3449 = vst [vmem:[#allocation21_spill] sm:$0xff] %v3044_v33 }
 0x329   :  { %v1120_v46 = vpop.f32.mrf.mxu2 }
 0x32a   :  { %v1206_v26 = vmul.f32 %v1195_v8, %v1120_v46  ;;  %v1273_v43 = vpop.f32.mrf.mxu3  ;;  %v1341_v46 = vsel %vm876_vm8, %v1333_v2, %v2865_v50  ;;  %v1334_v50 = vsel %vm87_vm0, %v2756_v34, %v2794_v42 }
 0x32b   :  { %v3033_v48 = vpop.f32.mrf.mxu1  ;;  %v1359_v6 = vmul.f32 %v1348_v7, %v1273_v43  ;;  %v1196_v43 = vsel %vm885_vm9, %v1188_v3, %v2744_v31  ;;  %v1349_v7 = vsel %vm885_vm9, %v1341_v46, %v2870_v51  ;;  %v3069_v3 = vpop.permute.xlu1 %1494  ;;  %v1189_v51 = vsel %vm876_vm8, %v1181_v40, %v2901_v9 }
 0x32c   :  { %v1222_v25 = vadd.f32 %v1206_v26, %v2881_v56  ;;  %3454 = vst [vmem:[#allocation26_spill] sm:$0xff] %v3069_v3  ;;  %v3073_v46 = vpop.permute.xlu2 %1506  ;;  %v1182_v40 = vsel %vm87_vm0, %v2806_v59, %v2927_v28 }
 0x32d   :  { %v1190_v3 = vsel %vm876_vm8, %v1182_v40, %v2932_v10 }
 0x32e   :  { %v3046_v36 = vadd.f32 %v1359_v6, %v1222_v25 }
 0x330   :  { %3450 = vst [vmem:[#allocation22_spill] sm:$0xff] %v3046_v36  ;;  %v1201_v36 = vmul.f32 %v2989_v18, %v2770_v14 }
 0x331   :  { %v1123_v56 = vpop.f32.mrf.mxu2 }
 0x332   :  { %v1208_v26 = vmul.f32 %v1196_v43, %v1123_v56  ;;  %v1276_v8 = vpop.f32.mrf.mxu3  ;;  %v1342_v56 = vsel %vm876_vm8, %v1334_v50, %v2896_v62  ;;  %v3077_v43 = vpop.permute.xlu0 %1510  ;;  %v3091_v62 = vld [vmem:[%s3417_s0] sm:$0xff] }
 0x333   :  { %v3058_v33 = vpop.f32.mrf.mxu1  ;;  %v1361_v25 = vmul.f32 %v1349_v7, %v1276_v8  ;;  %v1197_v8 = vsel %vm885_vm9, %v1189_v51, %v2756_v34  ;;  %v868_v50 = vsel %vm87_vm0, %v3091_v62, %v2722_v29  ;;  %v1023_v51 = vsel %vm87_vm0, %v2812_v53, %v3091_v62 }
 0x334   :  { %3452 = vst [vmem:[#allocation24_spill] sm:$0xff] %v3058_v33  ;;  %v1224_v6 = vadd.f32 %v1208_v26, %v2912_v52  ;;  %v1305_v52 = vpop.f32.mrf.mxu0  ;;  %v895_v40 = vmul.f32 %v3091_v62, %v2784_v39 }
 0x336   :  { %v3067_v2 = vadd.f32 %v1361_v25, %v1224_v6  ;;  %v1350_v25 = vsel %vm885_vm9, %v1342_v56, %v2901_v9 }
 0x338   :  { %3453 = vst [vmem:[#allocation25_spill] sm:$0xff] %v3067_v2  ;;  %v877_v2 = vsel %vm876_vm8, %v868_v50, %v2770_v14  ;;  %v1048_v50 = vmul.f32 %v2788_v41, %v2812_v53 }
 0x339   :  { %v1126_v26 = vpop.f32.mrf.mxu2 }
 0x33a   :  { %v1210_v7 = vmul.f32 %v1197_v8, %v1126_v26  ;;  %v1279_v6 = vpop.f32.mrf.mxu3  ;;  %v1335_v26 = vsel %vm87_vm0, %v2768_v37, %v2806_v59  ;;  %v886_v59 = vsel %vm885_vm9, %v877_v2, %v2812_v53  ;;  %v3140_v34 = vpop.permute.xlu0 %1516 }
 0x33b   :  { %v3083_v15 = vpop.f32.mrf.mxu1  ;;  %v1363_v56 = vmul.f32 %v1350_v25, %v1279_v6  ;;  %v3119_v6 = vpop.permute.xlu1 %1508  ;;  %v1343_v25 = vsel %vm876_vm8, %v1335_v26, %v2927_v28  ;;  %3457 = vst [vmem:[#allocation29_spill] sm:$0xff] %v3140_v34  ;;  %v1064_v34 = vadd.f32 %v1048_v50, %v895_v40  ;;  %v894_v33 = vmul.f32 %v886_v59, %v2796_v45  ;;  %v3177_v59 = vld [vmem:[%s3417_s0 + $0x20] sm:$0xff] }
 0x33c   :  { %3455 = vst [vmem:[#allocation27_spill] sm:$0xff] %v3083_v15  ;;  %v1226_v9 = vadd.f32 %v1210_v7, %v2943_v21  ;;  %v1031_v15 = vsel %vm876_vm8, %v1023_v51, %v2722_v29  ;;  %v3114_v21 = vld [vmem:[%s3417_s0 + $0x10] sm:$0xff]  ;;  %v1351_v2 = vsel %vm885_vm9, %v1343_v25, %v2932_v10  ;;  %v1336_v10 = vsel %vm87_vm0, %v2758_v35, %v2822_v24 }
 0x33d   :  { %v869_v7 = vsel %vm87_vm0, %v3114_v21, %v2728_v5  ;;  %v1024_v51 = vsel %vm87_vm0, %v2828_v0, %v3114_v21  ;;  %v1039_v28 = vsel %vm885_vm9, %v1031_v15, %v2770_v14  ;;  %v1217_v40 = vadd.f32 %v1201_v36, %v1064_v34 }
 0x33e   :  { %v3103_v8 = vadd.f32 %v1363_v56, %v1226_v9  ;;  %v1198_v56 = vsel %vm885_vm9, %v1190_v3, %v2768_v37  ;;  %v878_v39 = vsel %vm876_vm8, %v869_v7, %v2782_v38  ;;  %v1176_v3 = vsel %vm87_vm0, %v2770_v14, %v2812_v53  ;;  %v3147_v37 = vpop.f32.mrf.mxu0 }
 0x33f   :  { %v1183_v7 = vsel %vm87_vm0, %v2822_v24, %v2958_v49  ;;  %v887_v42 = vsel %vm885_vm9, %v878_v39, %v2828_v0  ;;  %v1047_v25 = vmul.f32 %v1039_v28, %v2798_v47  ;;  %v870_v47 = vsel %vm87_vm0, %v3177_v59, %v2746_v32 }
 0x340   :  { %3456 = vst [vmem:[#allocation28_spill] sm:$0xff] %v3103_v8  ;;  %v3132_v8 = vpop.permute.xlu2 %1512  ;;  %v1329_v50 = vsel %vm87_vm0, %v2722_v29, %v2770_v14  ;;  %v1050_v28 = vmul.f32 %v2804_v60, %v2828_v0  ;;  %v1025_v39 = vsel %vm87_vm0, %v2861_v20, %v3177_v59  ;;  %v1868_v14 = vld [vmem:[%s3417_s0 + $0x8] sm:$0xff] }
 0x341   :  { %v1129_v9 = vpop.f32.mrf.mxu2 }
 0x342   :  { %v1212_v41 = vmul.f32 %v1198_v56, %v1129_v9  ;;  %v1282_v26 = vpop.f32.mrf.mxu3  ;;  %v1032_v9 = vsel %vm876_vm8, %v1024_v51, %v2728_v5  ;;  %v897_v51 = vmul.f32 %v3114_v21, %v2800_v54  ;;  %v1554_v54 = vsel %vm87_vm0, %v1868_v14, %v3011_v13 }
 0x343   :  { %v3151_v15 = vpop.f32.mrf.mxu1  ;;  %v1365_v56 = vmul.f32 %v1351_v2, %v1282_v26  ;;  %v1040_v45 = vsel %vm885_vm9, %v1032_v9, %v2782_v38  ;;  %v1354_v26 = vmul.f32 %v1305_v52, %v2722_v29  ;;  %v3207_v52 = vpop.permute.xlu1 %1514  ;;  %v1203_v9 = vmul.f32 %v2997_v58, %v2782_v38 }
 0x344   :  { %3458 = vst [vmem:[#allocation30_spill] sm:$0xff] %v3151_v15  ;;  %v1228_v18 = vadd.f32 %v1212_v41, %v2974_v16  ;;  %v1184_v15 = vsel %vm876_vm8, %v1176_v3, %v3091_v62  ;;  %v1191_v16 = vsel %vm876_vm8, %v1183_v7, %v2963_v57  ;;  %v1344_v41 = vsel %vm876_vm8, %v1336_v10, %v2958_v49 }
 0x345   :  { %v1192_v34 = vsel %vm885_vm9, %v1184_v15, %v2722_v29  ;;  %v1199_v36 = vsel %vm885_vm9, %v1191_v16, %v2758_v35  ;;  %v1063_v3 = vadd.f32 %v1047_v25, %v894_v33  ;;  %v1337_v49 = vsel %vm876_vm8, %v1329_v50, %v2812_v53  ;;  %v1531_v16 = vpop.permute.xlu0 %1530 }
 0x346   :  { %v3168_v31 = vadd.f32 %v1365_v56, %v1228_v18  ;;  %v1200_v2 = vmul.f32 %v1192_v34, %v2993_v12  ;;  %v1370_v7 = vadd.f32 %v1354_v26, %v1217_v40  ;;  %v1177_v13 = vsel %vm87_vm0, %v2782_v38, %v2828_v0  ;;  %v1311_v26 = vpop.f32.mrf.mxu0 }
 0x347   :  { %v1352_v33 = vsel %vm885_vm9, %v1344_v41, %v2963_v57  ;;  %v1562_v12 = vsel %vm876_vm8, %v1554_v54, %v3073_v46  ;;  %v1066_v40 = vadd.f32 %v1050_v28, %v897_v51  ;;  %v879_v58 = vsel %vm876_vm8, %v870_v47, %v2772_v44 }
 0x348   :  { %v3219_v10 = vpop.permute.xlu2 %1518  ;;  %v1033_v50 = vsel %vm876_vm8, %v1025_v39, %v2746_v32  ;;  %v1216_v57 = vadd.f32 %v1200_v2, %v1063_v3  ;;  %v1185_v41 = vsel %vm876_vm8, %v1177_v13, %v3114_v21  ;;  %v896_v34 = vmul.f32 %v887_v42, %v2814_v19 }
 0x349   :  { %v1132_v60 = vpop.f32.mrf.mxu2  ;;  %v1345_v51 = vsel %vm885_vm9, %v1337_v49, %v3091_v62  ;;  %v1570_v47 = vsel %vm885_vm9, %v1562_v12, %v1531_v16  ;;  %v888_v28 = vsel %vm885_vm9, %v879_v58, %v2861_v20  ;;  %v1219_v54 = vadd.f32 %v1203_v9, %v1066_v40  ;;  %v3461_v58 = vld [vmem:[#allocation15_spill] sm:$0xff] }
 0x34a   :  { %v1214_v29 = vmul.f32 %v1199_v36, %v1132_v60  ;;  %v1285_v15 = vpop.f32.mrf.mxu3  ;;  %v1353_v39 = vmul.f32 %v1345_v51, %v2995_v1  ;;  %v1330_v60 = vsel %vm87_vm0, %v2728_v5, %v2782_v38  ;;  %v899_v42 = vmul.f32 %v3177_v59, %v2818_v17  ;;  %v3462_v51 = vld [vmem:[#allocation16_spill] sm:$0xff] }
 0x34b   :  { %v1458_v18 = vpop.f32.mrf.mxu1  ;;  %v1367_v56 = vmul.f32 %v1352_v33, %v1285_v15  ;;  %v1041_v19 = vsel %vm885_vm9, %v1033_v50, %v2772_v44  ;;  %v1052_v1 = vmul.f32 %v2820_v63, %v2861_v20  ;;  %v1356_v38 = vmul.f32 %v3147_v37, %v2728_v5  ;;  %v1869_v63 = vld [vmem:[%s3417_s0 + $0x18] sm:$0xff] }
 0x34c   :  { %v1230_v53 = vadd.f32 %v1214_v29, %v2991_v23  ;;  %v1579_v25 = vmul.f32 %v1868_v14, %v1458_v18  ;;  %v1049_v14 = vmul.f32 %v1040_v45, %v2816_v61  ;;  %v1193_v61 = vsel %vm885_vm9, %v1185_v41, %v2728_v5 }
 0x34d   :  { %v1369_v45 = vadd.f32 %v1353_v39, %v1216_v57  ;;  %v1202_v36 = vmul.f32 %v1193_v61, %v2999_v11  ;;  %v1338_v17 = vsel %vm876_vm8, %v1330_v60, %v2828_v0  ;;  %v1178_v49 = vsel %vm87_vm0, %v2772_v44, %v2861_v20  ;;  %v3267_v11 = vpop.permute.xlu1 %1520  ;;  %v3463_v60 = vld [vmem:[#allocation19_spill] sm:$0xff] }
 0x34e   :  { %v3227_v46 = vadd.f32 %v1367_v56, %v1230_v53  ;;  %v1595_v23 = vadd.f32 %v1579_v25, %v1370_v7  ;;  %v1065_v2 = vadd.f32 %v1049_v14, %v896_v34  ;;  %v1555_v29 = vsel %vm87_vm0, %v1869_v63, %v3003_v27  ;;  %v3459_v53 = vld [vmem:[#allocation8_spill] sm:$0xff]  ;;  %v3460_v56 = vld [vmem:[#allocation9_spill] sm:$0xff]  ;;  %v1314_v40 = vpop.f32.mrf.mxu0 }
 0x34f   :  { %v1372_v5 = vadd.f32 %v1356_v38, %v1219_v54  ;;  %v1205_v37 = vmul.f32 %v3005_v22, %v2772_v44  ;;  %v1068_v9 = vadd.f32 %v1052_v1, %v899_v42  ;;  %v1186_v33 = vsel %vm876_vm8, %v1178_v49, %v3177_v59  ;;  %v1870_v54 = vld [vmem:[%s3417_s0 + $0x28] sm:$0xff]  ;;  %v3464_v1 = vld [vmem:[#allocation5_spill] sm:$0xff] }
 0x350   :  { %1611 = vst.msk [vmem:[%s3423_s6 + $0x8] sm:$0xff] %vm87_vm0, %v1595_v23  ;;  %v1218_v13 = vadd.f32 %v1202_v36, %v1065_v2  ;;  %v1563_v18 = vsel %vm876_vm8, %v1555_v29, %v3119_v6  ;;  %v1533_v27 = vpop.permute.xlu2 %1532  ;;  %v898_v22 = vmul.f32 %v888_v28, %v3459_v53  ;;  %v1051_v25 = vmul.f32 %v1041_v19, %v3460_v56  ;;  %v3468_v56 = vld [vmem:[#allocation11_spill] sm:$0xff] }
 0x351   :  { %v1417_v62 = vpop.f32.mrf.mxu2  ;;  %v1346_v16 = vsel %vm885_vm9, %v1338_v17, %v3114_v21  ;;  %v1221_v57 = vadd.f32 %v1205_v37, %v1068_v9  ;;  %v1331_v6 = vsel %vm87_vm0, %v2746_v32, %v2772_v44  ;;  %v1194_v41 = vsel %vm885_vm9, %v1186_v33, %v2746_v32  ;;  %v3466_v17 = vld [vmem:[#allocation17_spill] sm:$0xff] }
 0x352   :  { %v1578_v3 = vmul.f32 %v1570_v47, %v1417_v62  ;;  %v1355_v50 = vmul.f32 %v1346_v16, %v3461_v58  ;;  %v1571_v34 = vsel %vm885_vm9, %v1563_v18, %v1533_v27  ;;  %v1358_v14 = vmul.f32 %v1311_v26, %v2746_v32  ;;  %v3465_v62 = vld [vmem:[#allocation18_spill] sm:$0xff]  ;;  %v3470_v58 = vld [vmem:[#allocation20_spill] sm:$0xff] }
 0x353   :  { %v1461_v15 = vpop.f32.mrf.mxu1  ;;  %v1204_v47 = vmul.f32 %v1194_v41, %v3462_v51  ;;  %v1067_v39 = vadd.f32 %v1051_v25, %v898_v22  ;;  %v1339_v44 = vsel %vm876_vm8, %v1331_v6, %v2861_v20  ;;  %v1556_v42 = vsel %vm87_vm0, %v1870_v54, %v3463_v60  ;;  %v1537_v22 = vpop.permute.xlu0 %1536 }
 0x354   :  { %v1594_v7 = vadd.f32 %v1578_v3, %v1369_v45  ;;  %v1581_v0 = vmul.f32 %v1869_v63, %v1461_v15  ;;  %v1371_v21 = vadd.f32 %v1355_v50, %v1218_v13  ;;  %v1374_v61 = vadd.f32 %v1358_v14, %v1221_v57  ;;  %v3467_v63 = vld [vmem:[#allocation10_spill] sm:$0xff] }
 0x355   :  { %v1207_v45 = vmul.f32 %v3465_v62, %v3464_v1  ;;  %v1220_v38 = vadd.f32 %v1204_v47, %v1067_v39  ;;  %v1564_v36 = vsel %vm876_vm8, %v1556_v42, %v3077_v43  ;;  %v1535_v3 = vpop.permute.xlu1 %1534  ;;  %v1347_v2 = vsel %vm885_vm9, %v1339_v44, %v3177_v59  ;;  %v1871_v59 = vld [vmem:[%s3417_s0 + $0x38] sm:$0xff]  ;;  %v3473_v14 = vld [vmem:[#allocation22_spill] sm:$0xff] }
 0x356   :  { %1610 = vst [vmem:[%s3423_s6] sm:$0xff] %v1594_v7  ;;  %v1597_v12 = vadd.f32 %v1581_v0, %v1372_v5  ;;  %v1357_v49 = vmul.f32 %v1347_v2, %v3466_v17  ;;  %v1317_v15 = vpop.f32.mrf.mxu0  ;;  %v1572_v5 = vsel %vm885_vm9, %v1564_v36, %v1535_v3  ;;  %v1360_v7 = vmul.f32 %v1314_v40, %v2734_v30  ;;  %v3477_v36 = vld [vmem:[#allocation7_spill] sm:$0xff]  ;;  %v3479_v2 = vld [vmem:[#allocation25_spill] sm:$0xff] }
 0x357   :  { %v1223_v29 = vadd.f32 %v1207_v45, %v3467_v63  ;;  %v1557_v9 = vsel %vm87_vm0, %v1871_v59, %v3039_v4  ;;  %v1209_v18 = vmul.f32 %v3033_v48, %v2802_v55  ;;  %v3469_v48 = vld [vmem:[#allocation2_spill] sm:$0xff]  ;;  %v3476_v45 = vld [vmem:[#allocation21_spill] sm:$0xff]  ;;  %v3478_v3 = vld [vmem:[#allocation27_spill] sm:$0xff] }
 0x358   :  { %1613 = vst.msk [vmem:[%s3423_s6 + $0x18] sm:$0xff] %vm87_vm0, %v1597_v12  ;;  %v1373_v37 = vadd.f32 %v1357_v49, %v1220_v38  ;;  %v1565_v53 = vsel %vm876_vm8, %v1557_v9, %v3132_v8  ;;  %v1362_v16 = vmul.f32 %v1317_v15, %v3469_v48  ;;  %v1872_v8 = vld [vmem:[%s3417_s0 + $0x48] sm:$0xff]  ;;  %v1539_v39 = vpop.permute.xlu2 %1538  ;;  %v3482_v9 = vld [vmem:[#allocation4_spill] sm:$0xff] }
 0x359   :  { %v1420_v23 = vpop.f32.mrf.mxu2  ;;  %v1376_v33 = vadd.f32 %v1360_v7, %v1223_v29  ;;  %v1225_v25 = vadd.f32 %v1209_v18, %v3468_v56  ;;  %v1573_v55 = vsel %vm885_vm9, %v1565_v53, %v1537_v22  ;;  %v1558_v50 = vsel %vm87_vm0, %v1872_v8, %v3470_v58  ;;  %v3480_v29 = vld [vmem:[#allocation29_spill] sm:$0xff]  ;;  %v1874_v18 = vld [vmem:[%s3417_s0 + $0x68] sm:$0xff]  ;;  %v3486_v58 = vld [vmem:[#allocation14_spill] sm:$0xff] }
 0x35a   :  { %v1580_v28 = vmul.f32 %v1571_v34, %v1420_v23  ;;  %v3471_v23 = vld [vmem:[#allocation6_spill] sm:$0xff]  ;;  %v3472_v34 = vld [vmem:[#allocation24_spill] sm:$0xff] }
 0x35b   :  { %v1464_v19 = vpop.f32.mrf.mxu1  ;;  %v1378_v41 = vadd.f32 %v1362_v16, %v1225_v25  ;;  %v3485_v25 = vld [vmem:[#allocation28_spill] sm:$0xff]  ;;  %v1543_v16 = vpop.permute.xlu0 %1542 }
 0x35c   :  { %v1596_v32 = vadd.f32 %v1580_v28, %v1371_v21  ;;  %v1583_v26 = vmul.f32 %v1870_v54, %v1464_v19  ;;  %v1211_v21 = vmul.f32 %v3472_v34, %v3471_v23  ;;  %v1566_v28 = vsel %vm876_vm8, %v1558_v50, %v3207_v52  ;;  %v3474_v54 = vld [vmem:[#allocation12_spill] sm:$0xff]  ;;  %v1873_v52 = vld [vmem:[%s3417_s0 + $0x58] sm:$0xff]  ;;  %v3487_v23 = vld [vmem:[#allocation23_spill] sm:$0xff] }
 0x35d   :  { %v1574_v19 = vsel %vm885_vm9, %v1566_v28, %v1539_v39 }
 0x35e   :  { %1612 = vst [vmem:[%s3423_s6 + $0x10] sm:$0xff] %v1596_v32  ;;  %v1599_v20 = vadd.f32 %v1583_v26, %v1374_v61  ;;  %v1320_v57 = vpop.f32.mrf.mxu0  ;;  %v1227_v60 = vadd.f32 %v1211_v21, %v3474_v54  ;;  %v3475_v61 = vld [vmem:[#allocation3_spill] sm:$0xff]  ;;  %v1559_v32 = vsel %vm87_vm0, %v1873_v52, %v3476_v45 }
 0x35f   :  { %v1364_v1 = vmul.f32 %v1320_v57, %v3475_v61  ;;  %v1567_v15 = vsel %vm876_vm8, %v1559_v32, %v3480_v29 }
 0x360   :  { %1615 = vst.msk [vmem:[%s3423_s6 + $0x28] sm:$0xff] %vm87_vm0, %v1599_v20  ;;  %v1213_v20 = vmul.f32 %v3478_v3, %v3477_v36  ;;  %v1545_v39 = vpop.permute.xlu2 %1544 }
 0x361   :  { %v1423_v43 = vpop.f32.mrf.mxu2  ;;  %v1380_v38 = vadd.f32 %v1364_v1, %v1227_v60 }
 0x362   :  { %v1582_v0 = vmul.f32 %v1572_v5, %v1423_v43  ;;  %v1541_v43 = vpop.permute.xlu1 %1540 }
 0x363   :  { %v1467_v13 = vpop.f32.mrf.mxu1 }
 0x364   :  { %v1598_v27 = vadd.f32 %v1582_v0, %v1373_v37  ;;  %v1585_v12 = vmul.f32 %v1871_v59, %v1467_v13  ;;  %v3481_v37 = vld [vmem:[#allocation13_spill] sm:$0xff]  ;;  %v1575_v59 = vsel %vm885_vm9, %v1567_v15, %v1541_v43 }
 0x365   :  { %v1229_v7 = vadd.f32 %v1213_v20, %v3481_v37 }
 0x366   :  { %1614 = vst [vmem:[%s3423_s6 + $0x20] sm:$0xff] %v1598_v27  ;;  %v1601_v30 = vadd.f32 %v1585_v12, %v1376_v33  ;;  %v1323_v63 = vpop.f32.mrf.mxu0  ;;  %v3483_v27 = vld [vmem:[#allocation26_spill] sm:$0xff] }
 0x367   :  { %v1366_v13 = vmul.f32 %v1323_v63, %v3482_v9  ;;  %v1560_v12 = vsel %vm87_vm0, %v1874_v18, %v3483_v27 }
 0x368   :  { %1617 = vst.msk [vmem:[%s3423_s6 + $0x38] sm:$0xff] %vm87_vm0, %v1601_v30  ;;  %v3484_v30 = vld [vmem:[#allocation30_spill] sm:$0xff]  ;;  %v1568_v48 = vsel %vm876_vm8, %v1560_v12, %v3219_v10 }
 0x369   :  { %v1426_v4 = vpop.f32.mrf.mxu2  ;;  %v1382_v22 = vadd.f32 %v1366_v13, %v1229_v7  ;;  %v1215_v56 = vmul.f32 %v3484_v30, %v2822_v24  ;;  %v1576_v57 = vsel %vm885_vm9, %v1568_v48, %v1543_v16 }
 0x36a   :  { %v1584_v40 = vmul.f32 %v1573_v55, %v1426_v4 }
 0x36b   :  { %v1470_v6 = vpop.f32.mrf.mxu1  ;;  %v1231_v50 = vadd.f32 %v1215_v56, %v3486_v58 }
 0x36c   :  { %v1600_v51 = vadd.f32 %v1584_v40, %v3473_v14  ;;  %v1587_v47 = vmul.f32 %v1872_v8, %v1470_v6 }
 0x36e   :  { %1616 = vst [vmem:[%s3423_s6 + $0x30] sm:$0xff] %v1600_v51  ;;  %v1603_v44 = vadd.f32 %v1587_v47, %v1378_v41  ;;  %v1326_v8 = vpop.f32.mrf.mxu0  ;;  %v1875_v41 = vld [vmem:[%s3417_s0 + $0x78] sm:$0xff] }
 0x36f   :  { %v1368_v6 = vmul.f32 %v1326_v8, %v2758_v35  ;;  %v1561_v34 = vsel %vm87_vm0, %v1875_v41, %v3487_v23 }
 0x370   :  { %1619 = vst.msk [vmem:[%s3423_s6 + $0x48] sm:$0xff] %vm87_vm0, %v1603_v44  ;;  %v1569_v28 = vsel %vm876_vm8, %v1561_v34, %v3267_v11 }
 0x371   :  { %v1429_v42 = vpop.f32.mrf.mxu2  ;;  %v1384_v14 = vadd.f32 %v1368_v6, %v1231_v50  ;;  %v1577_v54 = vsel %vm885_vm9, %v1569_v28, %v1545_v39 }
 0x372   :  { %v1586_v62 = vmul.f32 %v1574_v19, %v1429_v42 }
 0x373   :  { %v1473_v26 = vpop.f32.mrf.mxu1 }
 0x374   :  { %v1602_v17 = vadd.f32 %v1586_v62, %v3479_v2  ;;  %v1589_v49 = vmul.f32 %v1873_v52, %v1473_v26 }
 0x376   :  { %1618 = vst [vmem:[%s3423_s6 + $0x40] sm:$0xff] %v1602_v17  ;;  %v1605_v5 = vadd.f32 %v1589_v49, %v1380_v38 }
 0x378   :  { %1621 = vst.msk [vmem:[%s3423_s6 + $0x58] sm:$0xff] %vm87_vm0, %v1605_v5 }
 0x379   :  { %v1432_v0 = vpop.f32.mrf.mxu2 }
 0x37a   :  { %v1588_v33 = vmul.f32 %v1575_v59, %v1432_v0 }
 0x37b   :  { %v1476_v53 = vpop.f32.mrf.mxu1 }
 0x37c   :  { %v1604_v4 = vadd.f32 %v1588_v33, %v3485_v25  ;;  %v1591_v55 = vmul.f32 %v1874_v18, %v1476_v53 }
 0x37e   :  { %1620 = vst [vmem:[%s3423_s6 + $0x50] sm:$0xff] %v1604_v4  ;;  %v1607_v40 = vadd.f32 %v1591_v55, %v1382_v22 }
 0x380   :  { %1623 = vst.msk [vmem:[%s3423_s6 + $0x68] sm:$0xff] %vm87_vm0, %v1607_v40 }
 0x381   :  { %v1435_v24 = vpop.f32.mrf.mxu2 }
 0x382   :  { %v1590_v10 = vmul.f32 %v1576_v57, %v1435_v24 }
 0x383   :  { %v1479_v21 = vpop.f32.mrf.mxu1 }
 0x384   :  { %v1606_v51 = vadd.f32 %v1590_v10, %v3168_v31  ;;  %v1593_v47 = vmul.f32 %v1875_v41, %v1479_v21 }
 0x386   :  { %1622 = vst [vmem:[%s3423_s6 + $0x60] sm:$0xff] %v1606_v51  ;;  %v1609_v35 = vadd.f32 %v1593_v47, %v1384_v14 }
 0x388   :  { %1625 = vst.msk [vmem:[%s3423_s6 + $0x78] sm:$0xff] %vm87_vm0, %v1609_v35 }
 0x389   :  { %v1438_v44 = vpop.f32.mrf.mxu2 }
 0x38a   :  { %v1592_v60 = vmul.f32 %v1577_v54, %v1438_v44 }
 0x38c   :  { %v1608_v31 = vadd.f32 %v1592_v60, %v3227_v46 }
 0x38e   :  { %1624 = vst [vmem:[%s3423_s6 + $0x70] sm:$0xff] %v1608_v31 }

</bundles_post_ra>
